<compile_context>
chip_gen: v7x
topology: tpu7x:2x2x1
jax: 0.10.0
libtpu: 0.0.40
codegen_flags: <defaults>
</compile_context>

<pallas_src>
import functools

import jax
import jax.numpy as jnp
import numpy as np
from jax.experimental import pallas as pl
from jax.experimental.pallas import tpu as pltpu


def _input_proj_kernel(x_ref, w_ref, b_ref, o_ref, xpad_ref, *,
                       H, W, C, K, pad, neg_slope):
    # x_ref:    (1, H, W, C)        one image, NHWC, input dtype
    # w_ref:    (K*K, C, D)         conv taps, tap index leading, weight dtype
    # b_ref:    (1, D)
    # o_ref:    (1, H*W, D)         tokens out
    # xpad_ref: (H+2p, W+2p, C)     VMEM scratch for in-kernel zero padding
    D = w_ref.shape[-1]

    # In-kernel zero padding (no extra HBM round-trip from jnp.pad).  Static
    # slice offsets -> plain vector stores.
    xpad_ref[...] = jnp.zeros_like(xpad_ref)
    xpad_ref[pad:pad + H, pad:pad + W, :] = x_ref[0]
    xp = xpad_ref[...]                                   # (Hp, Wp, C)

    # Hoisted loads / casts (do NOT repeat inside the unrolled tap loop).
    wf = w_ref[...]                                      # (K*K, C, D)
    bias = b_ref[...].astype(jnp.float32)                # (1, D)

    # Pre-compute the K width-shifted views once (sublane shifts); the inner
    # K*K loop then slices only the free leading (H) dimension.
    xs = [xp[:, dj:dj + W, :] for dj in range(K)]        # each (Hp, W, C)

    # f32 accumulator initialized with the broadcast bias (fuses the bias add).
    acc = jnp.broadcast_to(bias, (H * W, D)).astype(jnp.float32)

    # 3x3 conv as K*K accumulated MXU matmuls: (H*W, C) x (C, D) -> f32 acc.
    for di in range(K):
        for dj in range(K):
            tap = xs[dj][di:di + H].reshape(H * W, C)    # layout-preserving
            acc = acc + jnp.dot(tap, wf[di * K + dj],
                                preferred_element_type=jnp.float32)

    # LeakyReLU (PyTorch default negative_slope = 0.01).
    acc = jnp.where(acc >= 0.0, acc, acc * neg_slope)
    o_ref[0] = acc.astype(o_ref.dtype)


def input_proj_forward(x, w, b, *, kernel_size=3, stride=1, neg_slope=0.01):
    """x: (B, C, H, W) NCHW; w: (D, C, 3, 3) OIHW; b: (D,) -> (B, H*W, D)."""
    assert stride == 1, "TODO(synk): stride > 1 not implemented (module default)"
    assert kernel_size == 3, "module hard-codes a 3x3 conv; only k=3 supported"
    B, C, H, W = x.shape
    D, Cw, K, K2 = w.shape
    assert (Cw, K, K2) == (C, 3, 3)
    pad = kernel_size // 2                               # 'same' padding
    Hp, Wp = H + 2 * pad, W + 2 * pad

    # Cheap one-time input relayout; everything else is fused in the kernel.
    x_nhwc = jnp.transpose(x, (0, 2, 3, 1))              # (B, H, W, C)
    # (D, C, K, K) -> (K, K, C, D) -> (K*K, C, D): tap index on the leading dim.
    w_taps = jnp.transpose(w, (2, 3, 1, 0)).reshape(K * K, C, D)
    b_row = b.reshape(1, D)

    kernel = functools.partial(_input_proj_kernel, H=H, W=W, C=C, K=K,
                               pad=pad, neg_slope=neg_slope)

    in_bytes = x.dtype.itemsize
    w_bytes = w.dtype.itemsize
    flops = 2 * B * H * W * K * K * C * D
    bytes_accessed = (in_bytes * B * H * W * C + w_bytes * (K * K * C * D + D)
                      + in_bytes * B * H * W * D)

    return pl.pallas_call(
        kernel,
        out_shape=jax.ShapeDtypeStruct((B, H * W, D), x.dtype),
        grid_spec=pltpu.PrefetchScalarGridSpec(
            num_scalar_prefetch=0,
            grid=(B,),
            in_specs=[
                pl.BlockSpec((1, H, W, C), lambda bidx: (bidx, 0, 0, 0)),
                pl.BlockSpec((K * K, C, D), lambda bidx: (0, 0, 0)),
                pl.BlockSpec((1, D), lambda bidx: (0, 0)),
            ],
            out_specs=pl.BlockSpec((1, H * W, D), lambda bidx: (bidx, 0, 0)),
            scratch_shapes=[pltpu.VMEM((Hp, Wp, C), x.dtype)],
        ),
        compiler_params=pltpu.CompilerParams(
            dimension_semantics=("parallel",)),
        cost_estimate=pl.CostEstimate(
            flops=flops, transcendentals=0, bytes_accessed=bytes_accessed),
    )(x_nhwc, w_taps, b_row)


if __name__ == "__main__":
    # Small shapes consistent with the module defaults:
    # in_channel=3, out_channel=64, kernel_size=3, stride=1, norm=None.
    B, C, H, W = 2, 3, 16, 16
    D = 64
    K = 3
    neg_slope = 0.01

    key = jax.random.PRNGKey(0)
    kx, kw, kb = jax.random.split(key, 3)
    x = jax.random.normal(kx, (B, C, H, W), jnp.float32)
    w = 0.1 * jax.random.normal(kw, (D, C, K, K), jnp.float32)   # OIHW
    b = 0.1 * jax.random.normal(kb, (D,), jnp.float32)

    out = input_proj_forward(x, w, b, kernel_size=K, stride=1,
                             neg_slope=neg_slope)
    jax.block_until_ready(out)
    assert out.shape == (B, H * W, D)

    # Pure-JAX reference: conv (NCHW) + bias + LeakyReLU + flatten/transpose.
    ref = jax.lax.conv_general_dilated(
        x, w, window_strides=(1, 1), padding=[(1, 1), (1, 1)],
        dimension_numbers=("NCHW", "OIHW", "NCHW"))
    ref = ref + b[None, :, None, None]
    ref = jnp.where(ref >= 0.0, ref, neg_slope * ref)
    ref = ref.reshape(B, D, H * W).transpose(0, 2, 1)

    np.testing.assert_allclose(np.asarray(out), np.asarray(ref),
                               rtol=1e-4, atol=1e-4)
    print("KERNEL_OK")
</pallas_src>

<mosaic_0001>
module attributes {stable_mosaic.version = 11 : i64} {
  func.func @_input_proj_kernel(%arg0: i32, %arg1: memref<1x16x16x3xf32, #tpu.memory_space<vmem>>, %arg2: memref<9x3x64xf32, #tpu.memory_space<vmem>>, %arg3: memref<1x64xf32, #tpu.memory_space<vmem>>, %arg4: memref<1x256x64xf32, #tpu.memory_space<vmem>>, %arg5: memref<18x18x3xf32, #tpu.memory_space<vmem>>) attributes {dimension_semantics = [#tpu.dimension_semantics<parallel>], iteration_bounds = array<i64: 2>, scalar_prefetch = 0 : i64, scratch_operands = 1 : i64, tpu.core_type = #tpu.core_type<tc>, window_params = [{transform_indices = @transform_0, window_bounds = array<i64: 1, 16, 16, 3>}, {pipeline_mode = #tpu.pipeline_mode<synchronous>, transform_indices = @transform_1, window_bounds = array<i64: 9, 3, 64>}, {pipeline_mode = #tpu.pipeline_mode<synchronous>, transform_indices = @transform_2, window_bounds = array<i64: 1, 64>}, {transform_indices = @transform_3, window_bounds = array<i64: 1, 256, 64>}]} {
    %cst = arith.constant 0.000000e+00 : f32
    %0 = vector.broadcast %cst : f32 to vector<18x18x3xf32>
    %c0 = arith.constant 0 : index
    %c0_0 = arith.constant 0 : index
    %c0_1 = arith.constant 0 : index
    %1 = vector.load %arg5[%c0, %c0_0, %c0_1] : memref<18x18x3xf32, #tpu.memory_space<vmem>>, vector<18x18x3xf32>
    tpu.vector_store %arg5[%c0, %c0_0, %c0_1], %0 {strides = array<i32>} : memref<18x18x3xf32, #tpu.memory_space<vmem>>, vector<18x18x3xf32>,
    %c0_2 = arith.constant 0 : index
    %c0_3 = arith.constant 0 : index
    %c0_4 = arith.constant 0 : index
    %c0_5 = arith.constant 0 : index
    %2 = vector.load %arg1[%c0_2, %c0_3, %c0_4, %c0_5] : memref<1x16x16x3xf32, #tpu.memory_space<vmem>>, vector<1x16x16x3xf32>
    %3 = vector.shape_cast %2 : vector<1x16x16x3xf32> to vector<16x16x3xf32>
    %c1 = arith.constant 1 : index
    %c1_6 = arith.constant 1 : index
    %c0_7 = arith.constant 0 : index
    %4 = vector.load %arg5[%c1, %c1_6, %c0_7] : memref<18x18x3xf32, #tpu.memory_space<vmem>>, vector<16x16x3xf32>
    tpu.vector_store %arg5[%c1, %c1_6, %c0_7], %3 {strides = array<i32>} : memref<18x18x3xf32, #tpu.memory_space<vmem>>, vector<16x16x3xf32>,
    %c0_8 = arith.constant 0 : index
    %c0_9 = arith.constant 0 : index
    %c0_10 = arith.constant 0 : index
    %5 = vector.load %arg5[%c0_8, %c0_9, %c0_10] : memref<18x18x3xf32, #tpu.memory_space<vmem>>, vector<18x18x3xf32>
    %c0_11 = arith.constant 0 : index
    %c0_12 = arith.constant 0 : index
    %c0_13 = arith.constant 0 : index
    %6 = vector.load %arg2[%c0_11, %c0_12, %c0_13] : memref<9x3x64xf32, #tpu.memory_space<vmem>>, vector<9x3x64xf32>
    %c0_14 = arith.constant 0 : index
    %c0_15 = arith.constant 0 : index
    %7 = vector.load %arg3[%c0_14, %c0_15] : memref<1x64xf32, #tpu.memory_space<vmem>>, vector<1x64xf32>
    %8 = vector.extract_strided_slice %5 {offsets = [0, 0, 0], sizes = [18, 16, 3], strides = [1, 1, 1]} : vector<18x18x3xf32> to vector<18x16x3xf32>
    %9 = vector.extract_strided_slice %5 {offsets = [0, 1, 0], sizes = [18, 16, 3], strides = [1, 1, 1]} : vector<18x18x3xf32> to vector<18x16x3xf32>
    %10 = vector.extract_strided_slice %5 {offsets = [0, 2, 0], sizes = [18, 16, 3], strides = [1, 1, 1]} : vector<18x18x3xf32> to vector<18x16x3xf32>
    %11 = vector.shape_cast %7 : vector<1x64xf32> to vector<1x64xf32>
    %12 = vector.broadcast %11 : vector<1x64xf32> to vector<256x64xf32>
    %13 = vector.extract_strided_slice %8 {offsets = [0, 0, 0], sizes = [16, 16, 3], strides = [1, 1, 1]} : vector<18x16x3xf32> to vector<16x16x3xf32>
    %14 = vector.shape_cast %13 : vector<16x16x3xf32> to vector<256x3xf32>
    %15 = vector.extract_strided_slice %6 {offsets = [0, 0, 0], sizes = [1, 3, 64], strides = [1, 1, 1]} : vector<9x3x64xf32> to vector<1x3x64xf32>
    %16 = vector.shape_cast %15 : vector<1x3x64xf32> to vector<3x64xf32>
    %cst_16 = arith.constant dense<0.000000e+00> : vector<256x64xf32>
    %17 = tpu.matmul %14, %16, %cst_16 {dimension_numbers = #tpu.dot_dimension_numbers<[1], [0], [0], [1], [0, 0, 1, 1], [], []>} : vector<256x3xf32>, vector<3x64xf32>, vector<256x64xf32> -> vector<256x64xf32>
    %18 = arith.addf %12, %17 : vector<256x64xf32>
    %19 = vector.extract_strided_slice %9 {offsets = [0, 0, 0], sizes = [16, 16, 3], strides = [1, 1, 1]} : vector<18x16x3xf32> to vector<16x16x3xf32>
    %20 = vector.shape_cast %19 : vector<16x16x3xf32> to vector<256x3xf32>
    %21 = vector.extract_strided_slice %6 {offsets = [1, 0, 0], sizes = [1, 3, 64], strides = [1, 1, 1]} : vector<9x3x64xf32> to vector<1x3x64xf32>
    %22 = vector.shape_cast %21 : vector<1x3x64xf32> to vector<3x64xf32>
    %cst_17 = arith.constant dense<0.000000e+00> : vector<256x64xf32>
    %23 = tpu.matmul %20, %22, %cst_17 {dimension_numbers = #tpu.dot_dimension_numbers<[1], [0], [0], [1], [0, 0, 1, 1], [], []>} : vector<256x3xf32>, vector<3x64xf32>, vector<256x64xf32> -> vector<256x64xf32>
    %24 = arith.addf %18, %23 : vector<256x64xf32>
    %25 = vector.extract_strided_slice %10 {offsets = [0, 0, 0], sizes = [16, 16, 3], strides = [1, 1, 1]} : vector<18x16x3xf32> to vector<16x16x3xf32>
    %26 = vector.shape_cast %25 : vector<16x16x3xf32> to vector<256x3xf32>
    %27 = vector.extract_strided_slice %6 {offsets = [2, 0, 0], sizes = [1, 3, 64], strides = [1, 1, 1]} : vector<9x3x64xf32> to vector<1x3x64xf32>
    %28 = vector.shape_cast %27 : vector<1x3x64xf32> to vector<3x64xf32>
    %cst_18 = arith.constant dense<0.000000e+00> : vector<256x64xf32>
    %29 = tpu.matmul %26, %28, %cst_18 {dimension_numbers = #tpu.dot_dimension_numbers<[1], [0], [0], [1], [0, 0, 1, 1], [], []>} : vector<256x3xf32>, vector<3x64xf32>, vector<256x64xf32> -> vector<256x64xf32>
    %30 = arith.addf %24, %29 : vector<256x64xf32>
    %31 = vector.extract_strided_slice %8 {offsets = [1, 0, 0], sizes = [16, 16, 3], strides = [1, 1, 1]} : vector<18x16x3xf32> to vector<16x16x3xf32>
    %32 = vector.shape_cast %31 : vector<16x16x3xf32> to vector<256x3xf32>
    %33 = vector.extract_strided_slice %6 {offsets = [3, 0, 0], sizes = [1, 3, 64], strides = [1, 1, 1]} : vector<9x3x64xf32> to vector<1x3x64xf32>
    %34 = vector.shape_cast %33 : vector<1x3x64xf32> to vector<3x64xf32>
    %cst_19 = arith.constant dense<0.000000e+00> : vector<256x64xf32>
    %35 = tpu.matmul %32, %34, %cst_19 {dimension_numbers = #tpu.dot_dimension_numbers<[1], [0], [0], [1], [0, 0, 1, 1], [], []>} : vector<256x3xf32>, vector<3x64xf32>, vector<256x64xf32> -> vector<256x64xf32>
    %36 = arith.addf %30, %35 : vector<256x64xf32>
    %37 = vector.extract_strided_slice %9 {offsets = [1, 0, 0], sizes = [16, 16, 3], strides = [1, 1, 1]} : vector<18x16x3xf32> to vector<16x16x3xf32>
    %38 = vector.shape_cast %37 : vector<16x16x3xf32> to vector<256x3xf32>
    %39 = vector.extract_strided_slice %6 {offsets = [4, 0, 0], sizes = [1, 3, 64], strides = [1, 1, 1]} : vector<9x3x64xf32> to vector<1x3x64xf32>
    %40 = vector.shape_cast %39 : vector<1x3x64xf32> to vector<3x64xf32>
    %cst_20 = arith.constant dense<0.000000e+00> : vector<256x64xf32>
    %41 = tpu.matmul %38, %40, %cst_20 {dimension_numbers = #tpu.dot_dimension_numbers<[1], [0], [0], [1], [0, 0, 1, 1], [], []>} : vector<256x3xf32>, vector<3x64xf32>, vector<256x64xf32> -> vector<256x64xf32>
    %42 = arith.addf %36, %41 : vector<256x64xf32>
    %43 = vector.extract_strided_slice %10 {offsets = [1, 0, 0], sizes = [16, 16, 3], strides = [1, 1, 1]} : vector<18x16x3xf32> to vector<16x16x3xf32>
    %44 = vector.shape_cast %43 : vector<16x16x3xf32> to vector<256x3xf32>
    %45 = vector.extract_strided_slice %6 {offsets = [5, 0, 0], sizes = [1, 3, 64], strides = [1, 1, 1]} : vector<9x3x64xf32> to vector<1x3x64xf32>
    %46 = vector.shape_cast %45 : vector<1x3x64xf32> to vector<3x64xf32>
    %cst_21 = arith.constant dense<0.000000e+00> : vector<256x64xf32>
    %47 = tpu.matmul %44, %46, %cst_21 {dimension_numbers = #tpu.dot_dimension_numbers<[1], [0], [0], [1], [0, 0, 1, 1], [], []>} : vector<256x3xf32>, vector<3x64xf32>, vector<256x64xf32> -> vector<256x64xf32>
    %48 = arith.addf %42, %47 : vector<256x64xf32>
    %49 = vector.extract_strided_slice %8 {offsets = [2, 0, 0], sizes = [16, 16, 3], strides = [1, 1, 1]} : vector<18x16x3xf32> to vector<16x16x3xf32>
    %50 = vector.shape_cast %49 : vector<16x16x3xf32> to vector<256x3xf32>
    %51 = vector.extract_strided_slice %6 {offsets = [6, 0, 0], sizes = [1, 3, 64], strides = [1, 1, 1]} : vector<9x3x64xf32> to vector<1x3x64xf32>
    %52 = vector.shape_cast %51 : vector<1x3x64xf32> to vector<3x64xf32>
    %cst_22 = arith.constant dense<0.000000e+00> : vector<256x64xf32>
    %53 = tpu.matmul %50, %52, %cst_22 {dimension_numbers = #tpu.dot_dimension_numbers<[1], [0], [0], [1], [0, 0, 1, 1], [], []>} : vector<256x3xf32>, vector<3x64xf32>, vector<256x64xf32> -> vector<256x64xf32>
    %54 = arith.addf %48, %53 : vector<256x64xf32>
    %55 = vector.extract_strided_slice %9 {offsets = [2, 0, 0], sizes = [16, 16, 3], strides = [1, 1, 1]} : vector<18x16x3xf32> to vector<16x16x3xf32>
    %56 = vector.shape_cast %55 : vector<16x16x3xf32> to vector<256x3xf32>
    %57 = vector.extract_strided_slice %6 {offsets = [7, 0, 0], sizes = [1, 3, 64], strides = [1, 1, 1]} : vector<9x3x64xf32> to vector<1x3x64xf32>
    %58 = vector.shape_cast %57 : vector<1x3x64xf32> to vector<3x64xf32>
    %cst_23 = arith.constant dense<0.000000e+00> : vector<256x64xf32>
    %59 = tpu.matmul %56, %58, %cst_23 {dimension_numbers = #tpu.dot_dimension_numbers<[1], [0], [0], [1], [0, 0, 1, 1], [], []>} : vector<256x3xf32>, vector<3x64xf32>, vector<256x64xf32> -> vector<256x64xf32>
    %60 = arith.addf %54, %59 : vector<256x64xf32>
    %61 = vector.extract_strided_slice %10 {offsets = [2, 0, 0], sizes = [16, 16, 3], strides = [1, 1, 1]} : vector<18x16x3xf32> to vector<16x16x3xf32>
    %62 = vector.shape_cast %61 : vector<16x16x3xf32> to vector<256x3xf32>
    %63 = vector.extract_strided_slice %6 {offsets = [8, 0, 0], sizes = [1, 3, 64], strides = [1, 1, 1]} : vector<9x3x64xf32> to vector<1x3x64xf32>
    %64 = vector.shape_cast %63 : vector<1x3x64xf32> to vector<3x64xf32>
    %cst_24 = arith.constant dense<0.000000e+00> : vector<256x64xf32>
    %65 = tpu.matmul %62, %64, %cst_24 {dimension_numbers = #tpu.dot_dimension_numbers<[1], [0], [0], [1], [0, 0, 1, 1], [], []>} : vector<256x3xf32>, vector<3x64xf32>, vector<256x64xf32> -> vector<256x64xf32>
    %66 = arith.addf %60, %65 : vector<256x64xf32>
    %cst_25 = arith.constant 0.000000e+00 : f32
    %67 = vector.broadcast %cst_25 : f32 to vector<256x64xf32>
    %68 = arith.cmpf oge, %66, %67 : vector<256x64xf32>
    %cst_26 = arith.constant 0.00999999977 : f32
    %69 = vector.broadcast %cst_26 : f32 to vector<256x64xf32>
    %70 = arith.mulf %66, %69 : vector<256x64xf32>
    %71 = arith.select %68, %66, %70 : vector<256x64xi1>, vector<256x64xf32>
    %c0_27 = arith.constant 0 : index
    %c0_28 = arith.constant 0 : index
    %c0_29 = arith.constant 0 : index
    %72 = vector.load %arg4[%c0_27, %c0_28, %c0_29] : memref<1x256x64xf32, #tpu.memory_space<vmem>>, vector<1x256x64xf32>
    %73 = vector.shape_cast %72 : vector<1x256x64xf32> to vector<256x64xf32>
    %74 = vector.shape_cast %71 : vector<256x64xf32> to vector<1x256x64xf32>
    tpu.vector_store %arg4[%c0_27, %c0_28, %c0_29], %74 {strides = array<i32>} : memref<1x256x64xf32, #tpu.memory_space<vmem>>, vector<1x256x64xf32>,
    return
  }
  func.func @transform_0(%arg0: i32) -> (i32, i32, i32, i32) {
    %c0_i32 = arith.constant 0 : i32
    %c0_i32_0 = arith.constant 0 : i32
    %c0_i32_1 = arith.constant 0 : i32
    %c0_i32_2 = arith.constant 0 : i32
    return %arg0, %c0_i32, %c0_i32_0, %c0_i32_1 : i32, i32, i32, i32
  }
  func.func @transform_1(%arg0: i32) -> (i32, i32, i32) {
    %c0_i32 = arith.constant 0 : i32
    %c0_i32_0 = arith.constant 0 : i32
    %c0_i32_1 = arith.constant 0 : i32
    %c0_i32_2 = arith.constant 0 : i32
    return %c0_i32, %c0_i32_0, %c0_i32_1 : i32, i32, i32
  }
  func.func @transform_2(%arg0: i32) -> (i32, i32) {
    %c0_i32 = arith.constant 0 : i32
    %c0_i32_0 = arith.constant 0 : i32
    %c0_i32_1 = arith.constant 0 : i32
    return %c0_i32, %c0_i32_0 : i32, i32
  }
  func.func @transform_3(%arg0: i32) -> (i32, i32, i32) {
    %c0_i32 = arith.constant 0 : i32
    %c0_i32_0 = arith.constant 0 : i32
    %c0_i32_1 = arith.constant 0 : i32
    return %arg0, %c0_i32, %c0_i32_0 : i32, i32, i32
  }
}

</mosaic_0001>

<bundles_post_ra>
// kernel: tpu_custom_call.1
= control target key start
LH: loop header
LB: loop body
LE: loop exit
PB: predicated region body
PF: predicated region fallthrough
CT: control target
= control target key end

     0   :  { %s4726_s12 = smov 0   ;;  %s6074_s0 = inlined_call_operand.vmem [shape: f32[2,16,16,3], index: 0, kind: input, shape index: {}]   ;;  %s6075_s1 = inlined_call_operand.vmem [shape: f32[9,3,64], index: 1, kind: input, shape index: {}]   ;;  %s6076_s2 = inlined_call_operand.vmem [shape: f32[1,64], index: 2, kind: input, shape index: {}]   ;;  %s6077_s3 = inlined_call_operand.vmem [shape: f32[2,256,64], index: 3, kind: output, shape index: {}]  }
   0x1 LB: > { %s3339_s13 = sadd.s32 4294967295, %s4703_s12   ;;  %p3343_p0 = scmp.ge.s32.totalorder %s4703_s12, 1  ;;  %s4703_s12 = sphi %s4726_s12, %s13_s12  }
   0x2   : > { %p137_p1 = scmp.lt.s32.totalorder %s4703_s12, 3 }
   0x4   : > { %p138_p2 = pnand %p3343_p0, %p137_p1 }
   0x6   : > { %141 = sbr.rel (%p138_p2) target bundleno = 558 (0x22e), region = 32 }
   0xd   : > { %v346_v0 = vld [vmem:[%s6075_s1] sm:$0x7]  ;;  %vm458_vm0 = vcmask 1042432   ;;  %vm171_vm1 = vcmask 23552   ;;  %p4739_p3 = scmp.lt.s32.totalorder %s3339_s13, 1  ;;  %v4705_v1 = vmov 0.0  }
   0xe   : > { %3947 = vmatprep.subr.msk.mxu1 %vm458_vm0, %v346_v0  ;;  %172 = vst.msk [vmem:[#allocation2] sm:$0xff] %vm171_vm1, %v4705_v1  ;;  %173 = vst.msk [vmem:[#allocation2 + $0x8] sm:$0xff] %vm171_vm1, %v4705_v1  ;;  %vm174_vm2 = vcmask 17408   ;;  %v347_v2 = vld [vmem:[%s6075_s1 + $0x4] sm:$0x7]  ;;  %vm1140_vm3 = vcmask 1045504  }
   0xf   : > { %176 = vst.msk [vmem:[#allocation2 + $0x18] sm:$0xff] %vm171_vm1, %v4705_v1  ;;  %177 = vst.msk [vmem:[#allocation2 + $0x20] sm:$0xff] %vm171_vm1, %v4705_v1  ;;  %v4786_v3 = vld [vmem:[%s6075_s1 + $0x10] sm:$0x7]  ;;  %3948 = vmatpush3.msk.msra.mxu1 %vm458_vm0, %v346_v0  ;;  %s6252_s13 = smov (!%p4739_p3, %s3339_s13), 1  ;;  %vm735_vm4 = vcmask 1046528  }
  0x10   : > { %179 = vst.msk [vmem:[#allocation2 + $0x30] sm:$0xff] %vm171_vm1, %v4705_v1  ;;  %180 = vst.msk [vmem:[#allocation2 + $0x38] sm:$0xff] %vm171_vm1, %v4705_v1  ;;  %4147 = vmatprep.subr.msk.mxu0 %vm458_vm0, %v4786_v3  ;;  %v4818_v4 = vld [vmem:[%s6075_s1 + $0x14] sm:$0x7]  ;;  %3997 = vmatprep.subr.msk.mxu1 %vm458_vm0, %v347_v2  ;;  %s3648_s23 = sshll.u32 %s6252_s13, 8  ;;  %vm3251_vm6 = vcmask 523264  }
  0x11   : > { %182 = vst.msk [vmem:[#allocation2 + $0x48] sm:$0xff] %vm171_vm1, %v4705_v1  ;;  %183 = vst.msk [vmem:[#allocation2 + $0x50] sm:$0xff] %vm171_vm1, %v4705_v1  ;;  %4148 = vmatpush3.msk.msra.mxu0 %vm458_vm0, %v4786_v3  ;;  %s4831_s26 = scalar_lea.vmem %s6074_s0, %s3648_s23  ;;  %v4860_v18 = vld [vmem:[%s6075_s1 + $0x8] sm:$0x7]  ;;  %v4950_v54 = vld [vmem:[%s6075_s1 + $0x18] sm:$0x7]  ;;  %s5970_s18 = scalar_lea.vmem %s6077_s3, %s3648_s23 }
  0x12   : > { %185 = vst.msk [vmem:[#allocation2 + $0x60] sm:$0xff] %vm171_vm1, %v4705_v1  ;;  %186 = vst.msk [vmem:[#allocation2 + $0x68] sm:$0xff] %vm171_vm1, %v4705_v1  ;;  %4197 = vmatprep.subr.msk.mxu0 %vm458_vm0, %v4818_v4  ;;  %v227_v5 = vld [vmem:[%s4831_s26] sm:$0xff]  ;;  %v228_v6 = vld [vmem:[%s4831_s26 + $0x8] sm:$0xff] }
  0x13   : > { %188 = vst.msk [vmem:[#allocation2 + $0x78] sm:$0xff] %vm171_vm1, %v4705_v1  ;;  %189 = vst.msk [vmem:[#allocation2 + $0x80] sm:$0xff] %vm171_vm1, %v4705_v1  ;;  %v229_v7 = vld [vmem:[%s4831_s26 + $0x10] sm:$0xff]  ;;  %v230_v8 = vld [vmem:[%s4831_s26 + $0x18] sm:$0xff] }
  0x14   : > { %191 = vst.msk [vmem:[#allocation2 + $0x90] sm:$0xff] %vm171_vm1, %v4705_v1  ;;  %192 = vst.msk [vmem:[#allocation2 + $0x98] sm:$0xff] %vm171_vm1, %v4705_v1  ;;  %v231_v9 = vld [vmem:[%s4831_s26 + $0x20] sm:$0xff]  ;;  %v232_v10 = vld [vmem:[%s4831_s26 + $0x28] sm:$0xff] }
  0x15   : > { %194 = vst.msk [vmem:[#allocation2 + $0xa8] sm:$0xff] %vm171_vm1, %v4705_v1  ;;  %195 = vst.msk [vmem:[#allocation2 + $0xb0] sm:$0xff] %vm171_vm1, %v4705_v1  ;;  %v4842_v11 = vld [vmem:[#allocation2] sm:$0xff]  ;;  %v4844_v12 = vld [vmem:[#allocation2 + $0x8] sm:$0xff] }
  0x16   : > { %197 = vst.msk [vmem:[#allocation2 + $0xc0] sm:$0xff] %vm171_vm1, %v4705_v1  ;;  %198 = vst.msk [vmem:[#allocation2 + $0xc8] sm:$0xff] %vm171_vm1, %v4705_v1  ;;  %v233_v13 = vld [vmem:[%s4831_s26 + $0x30] sm:$0xff]  ;;  %3949 = vmatprep.mubr.msk.f32.mxu1 %vm171_vm1, %v4842_v11  ;;  %v1141_v14 = vrot.slane %v4842_v11, 2  ;;  %v1142_v15 = vrot.slane %v4844_v12, 2  ;;  %v234_v16 = vld [vmem:[%s4831_s26 + $0x38] sm:$0xff] }
  0x17   : > { %200 = vst.msk [vmem:[#allocation2 + $0xd8] sm:$0xff] %vm171_vm1, %v4705_v1  ;;  %201 = vst.msk [vmem:[#allocation2 + $0xe0] sm:$0xff] %vm171_vm1, %v4705_v1  ;;  %v235_v17 = vld [vmem:[%s4831_s26 + $0x40] sm:$0xff]  ;;  %3950 = vmatmul.mubr.msk.f32.vlgmr.msra.gmra.mrb[0].mxu1 %vm171_vm1, %v4844_v12  ;;  %v236_v19 = vld [vmem:[%s4831_s26 + $0x48] sm:$0xff] }
  0x18   : > { %203 = vst.msk [vmem:[#allocation2 + $0xf0] sm:$0xff] %vm171_vm1, %v4705_v1  ;;  %204 = vst.msk [vmem:[#allocation2 + $0xf8] sm:$0xff] %vm171_vm1, %v4705_v1  ;;  %v237_v20 = vld [vmem:[%s4831_s26 + $0x50] sm:$0xff]  ;;  %v238_v21 = vld [vmem:[%s4831_s26 + $0x58] sm:$0xff]  ;;  %3998 = vmatpush3.msk.msra.mxu1 %vm458_vm0, %v347_v2  ;;  %v4879_v25 = vsel %vm1140_vm3, %v1141_v14, %v1142_v15 }
  0x19   : > { %206 = vst.msk [vmem:[#allocation2 + $0x108] sm:$0xff] %vm171_vm1, %v4705_v1  ;;  %207 = vst.msk [vmem:[#allocation2 + $0x110] sm:$0xff] %vm171_vm1, %v4705_v1  ;;  %v239_v22 = vld [vmem:[%s4831_s26 + $0x60] sm:$0xff]  ;;  %v240_v23 = vld [vmem:[%s4831_s26 + $0x68] sm:$0xff]  ;;  %4047 = vmatprep.subr.msk.mxu1 %vm458_vm0, %v4860_v18 }
  0x1a   : > { %209 = vst.msk [vmem:[#allocation2 + $0x120] sm:$0xff] %vm171_vm1, %v4705_v1  ;;  %210 = vst.msk [vmem:[#allocation2 + $0x128] sm:$0xff] %vm171_vm1, %v4705_v1  ;;  %v241_v24 = vld [vmem:[%s4831_s26 + $0x70] sm:$0xff]  ;;  %v242_v26 = vld [vmem:[%s4831_s26 + $0x78] sm:$0xff] }
  0x1b   : > { %212 = vst.msk [vmem:[#allocation2 + $0x138] sm:$0xff] %vm171_vm1, %v4705_v1  ;;  %213 = vst.msk [vmem:[#allocation2 + $0x140] sm:$0xff] %vm171_vm1, %v4705_v1  ;;  %v243_v27 = vld [vmem:[%s4831_s26 + $0x80] sm:$0xff]  ;;  %v244_v28 = vld [vmem:[%s4831_s26 + $0x88] sm:$0xff] }
  0x1c   : > { %215 = vst.msk [vmem:[#allocation2 + $0x150] sm:$0xff] %vm171_vm1, %v4705_v1  ;;  %216 = vst.msk [vmem:[#allocation2 + $0x158] sm:$0xff] %vm171_vm1, %v4705_v1  ;;  %v245_v29 = vld [vmem:[%s4831_s26 + $0x90] sm:$0xff]  ;;  %v246_v30 = vld [vmem:[%s4831_s26 + $0x98] sm:$0xff] }
  0x1d   : > { %218 = vst.msk [vmem:[#allocation2 + $0x168] sm:$0xff] %vm171_vm1, %v4705_v1  ;;  %219 = vst.msk [vmem:[#allocation2 + $0x170] sm:$0xff] %vm171_vm1, %v4705_v1  ;;  %v247_v31 = vld [vmem:[%s4831_s26 + $0xa0] sm:$0xff]  ;;  %v252_v14 = vld [vmem:[%s4831_s26 + $0xc8] sm:$0xff] }
  0x1e   : > { %221 = vst.msk [vmem:[#allocation2 + $0x180] sm:$0xff] %vm171_vm1, %v4705_v1  ;;  %222 = vst.msk [vmem:[#allocation2 + $0x188] sm:$0xff] %vm171_vm1, %v4705_v1 }
  0x1f   : > { %224 = vst.msk [vmem:[#allocation2 + $0x198] sm:$0xff] %vm171_vm1, %v4705_v1  ;;  %225 = vst.msk [vmem:[#allocation2 + $0x1a0] sm:$0xff] %vm171_vm1, %v4705_v1 }
  0x20   : > { %6147 = vst [vmem:[#allocation3_spill] sm:$0xff] %v4786_v3  ;;  %178 = vst.msk [vmem:[#allocation2 + $0x28] sm:$0x3] %vm174_vm2, %v4705_v1  ;;  %v736_v3 = vrot.slane %v4842_v11, 1 }
  0x21   : > { %175 = vst.msk [vmem:[#allocation2 + $0x10] sm:$0x3] %vm174_vm2, %v4705_v1  ;;  %181 = vst.msk [vmem:[#allocation2 + $0x40] sm:$0x3] %vm174_vm2, %v4705_v1 }
  0x22   : > { %184 = vst.msk [vmem:[#allocation2 + $0x58] sm:$0x3] %vm174_vm2, %v4705_v1  ;;  %187 = vst.msk [vmem:[#allocation2 + $0x70] sm:$0x3] %vm174_vm2, %v4705_v1 }
  0x23   : > { %190 = vst.msk [vmem:[#allocation2 + $0x88] sm:$0x3] %vm174_vm2, %v4705_v1  ;;  %193 = vst.msk [vmem:[#allocation2 + $0xa0] sm:$0x3] %vm174_vm2, %v4705_v1 }
  0x24   : > { %196 = vst.msk [vmem:[#allocation2 + $0xb8] sm:$0x3] %vm174_vm2, %v4705_v1  ;;  %199 = vst.msk [vmem:[#allocation2 + $0xd0] sm:$0x3] %vm174_vm2, %v4705_v1 }
  0x25   : > { %202 = vst.msk [vmem:[#allocation2 + $0xe8] sm:$0x3] %vm174_vm2, %v4705_v1  ;;  %205 = vst.msk [vmem:[#allocation2 + $0x100] sm:$0x3] %vm174_vm2, %v4705_v1 }
  0x26   : > { %208 = vst.msk [vmem:[#allocation2 + $0x118] sm:$0x3] %vm174_vm2, %v4705_v1  ;;  %211 = vst.msk [vmem:[#allocation2 + $0x130] sm:$0x3] %vm174_vm2, %v4705_v1 }
  0x27   : > { %214 = vst.msk [vmem:[#allocation2 + $0x148] sm:$0x3] %vm174_vm2, %v4705_v1  ;;  %217 = vst.msk [vmem:[#allocation2 + $0x160] sm:$0x3] %vm174_vm2, %v4705_v1 }
  0x28   : > { %220 = vst.msk [vmem:[#allocation2 + $0x178] sm:$0x3] %vm174_vm2, %v4705_v1  ;;  %223 = vst.msk [vmem:[#allocation2 + $0x190] sm:$0x3] %vm174_vm2, %v4705_v1 }
  0x29   : > { %226 = vst.msk [vmem:[#allocation2 + $0x1a8] sm:$0x3] %vm174_vm2, %v4705_v1 }
  0x2a   : > { %260 = vst.msk [vmem:[#allocation2 + $0x19] sm:$0xff] %vm171_vm1, %v227_v5  ;;  %261 = vst.msk [vmem:[#allocation2 + $0x21] sm:$0xff] %vm171_vm1, %v228_v6 }
  0x2b   : > { %262 = vst.msk [vmem:[#allocation2 + $0x31] sm:$0xff] %vm171_vm1, %v229_v7  ;;  %263 = vst.msk [vmem:[#allocation2 + $0x39] sm:$0xff] %vm171_vm1, %v230_v8  ;;  %v248_v8 = vld [vmem:[%s4831_s26 + $0xa8] sm:$0xff] }
  0x2c   : > { %264 = vst.msk [vmem:[#allocation2 + $0x49] sm:$0xff] %vm171_vm1, %v231_v9  ;;  %265 = vst.msk [vmem:[#allocation2 + $0x51] sm:$0xff] %vm171_vm1, %v232_v10  ;;  %v249_v9 = vld [vmem:[%s4831_s26 + $0xb0] sm:$0xff]  ;;  %v250_v10 = vld [vmem:[%s4831_s26 + $0xb8] sm:$0xff] }
  0x2d   : > { %266 = vst.msk [vmem:[#allocation2 + $0x61] sm:$0xff] %vm171_vm1, %v233_v13  ;;  %267 = vst.msk [vmem:[#allocation2 + $0x69] sm:$0xff] %vm171_vm1, %v234_v16  ;;  %v251_v13 = vld [vmem:[%s4831_s26 + $0xc0] sm:$0xff]  ;;  %v253_v16 = vld [vmem:[%s4831_s26 + $0xd0] sm:$0xff] }
  0x2e   : > { %268 = vst.msk [vmem:[#allocation2 + $0x79] sm:$0xff] %vm171_vm1, %v235_v17  ;;  %269 = vst.msk [vmem:[#allocation2 + $0x81] sm:$0xff] %vm171_vm1, %v236_v19  ;;  %v254_v17 = vld [vmem:[%s4831_s26 + $0xd8] sm:$0xff]  ;;  %v255_v19 = vld [vmem:[%s4831_s26 + $0xe0] sm:$0xff] }
  0x2f   : > { %270 = vst.msk [vmem:[#allocation2 + $0x91] sm:$0xff] %vm171_vm1, %v237_v20  ;;  %271 = vst.msk [vmem:[#allocation2 + $0x99] sm:$0xff] %vm171_vm1, %v238_v21 }
  0x30   : > { %272 = vst.msk [vmem:[#allocation2 + $0xa9] sm:$0xff] %vm171_vm1, %v239_v22  ;;  %273 = vst.msk [vmem:[#allocation2 + $0xb1] sm:$0xff] %vm171_vm1, %v240_v23  ;;  %v256_v22 = vld [vmem:[%s4831_s26 + $0xe8] sm:$0xff]  ;;  %v257_v23 = vld [vmem:[%s4831_s26 + $0xf0] sm:$0xff] }
  0x31   : > { %274 = vst.msk [vmem:[#allocation2 + $0xc1] sm:$0xff] %vm171_vm1, %v241_v24  ;;  %275 = vst.msk [vmem:[#allocation2 + $0xc9] sm:$0xff] %vm171_vm1, %v242_v26  ;;  %v4895_v32 = vld [vmem:[#allocation2 + $0x18] sm:$0xff]  ;;  %v4897_v33 = vld [vmem:[#allocation2 + $0x20] sm:$0xff] }
  0x32   : > { %276 = vst.msk [vmem:[#allocation2 + $0xd9] sm:$0xff] %vm171_vm1, %v243_v27  ;;  %277 = vst.msk [vmem:[#allocation2 + $0xe1] sm:$0xff] %vm171_vm1, %v244_v28  ;;  %v4899_v34 = vld [vmem:[#allocation2 + $0x30] sm:$0xff]  ;;  %3952 = vmatprep.mubr.msk.f32.mxu1 %vm171_vm1, %v4895_v32  ;;  %v741_v35 = vrot.slane %v4895_v32, 1  ;;  %v742_v36 = vrot.slane %v4897_v33, 1  ;;  %v4913_v39 = vld [vmem:[#allocation2 + $0x38] sm:$0xff] }
  0x33   : > { %6148 = vst [vmem:[#allocation4_spill] sm:$0xff] %v4895_v32  ;;  %6149 = vst [vmem:[#allocation5_spill] sm:$0xff] %v4897_v33  ;;  %v4908_v37 = vld [vmem:[#allocation2 + $0x28] sm:$0x3]  ;;  %3953 = vmatmul.mubr.msk.f32.gmra.mrb[2].mxu1 %vm171_vm1, %v4897_v33  ;;  %v746_v40 = vrot.slane %v4899_v34, 1  ;;  %v4918_v42 = vld [vmem:[#allocation2 + $0x50] sm:$0xff] }
  0x34   : > { %278 = vst.msk [vmem:[#allocation2 + $0xf1] sm:$0xff] %vm171_vm1, %v245_v29  ;;  %279 = vst.msk [vmem:[#allocation2 + $0xf9] sm:$0xff] %vm171_vm1, %v246_v30  ;;  %v744_v38 = vrot.slane %v4908_v37, 1  ;;  %v4916_v41 = vld [vmem:[#allocation2 + $0x48] sm:$0xff]  ;;  %v4921_v43 = vsel %vm735_vm4, %v741_v35, %v742_v36  ;;  %3955 = vmatprep.mubr.msk.f32.mxu1 %vm171_vm1, %v4899_v34  ;;  %v747_v44 = vrot.slane %v4913_v39, 1  ;;  %v752_v47 = vrot.slane %v4918_v42, 1 }
  0x35   : > { %280 = vst.msk [vmem:[#allocation2 + $0x109] sm:$0xff] %vm171_vm1, %v247_v31  ;;  %v4926_v45 = vld [vmem:[#allocation2 + $0x40] sm:$0x3]  ;;  %v751_v46 = vrot.slane %v4916_v41, 1  ;;  %4149 = vmatprep.mubr.msk.f32.mxu0 %vm171_vm1, %v4921_v43  ;;  %v4938_v51 = vld [vmem:[#allocation2 + $0x58] sm:$0x3] }
  0x36   : > { %v4933_v48 = vsel %vm735_vm4, %v742_v36, %v744_v38  ;;  %v749_v49 = vrot.slane %v4926_v45, 1  ;;  %v4936_v50 = vld [vmem:[#allocation2 + $0x60] sm:$0xff]  ;;  %v4940_v52 = vld [vmem:[#allocation2 + $0x68] sm:$0xff]  ;;  %v4945_v53 = vsel %vm735_vm4, %v746_v40, %v747_v44  ;;  %v754_v56 = vrot.slane %v4938_v51, 1  ;;  %v4969_v60 = vld [vmem:[#allocation2 + $0x70] sm:$0x3] }
  0x37   : > { %4150 = vmatmul.mubr.msk.f32.vlgmr.msra.gmra.mrb[0].mxu0 %vm171_vm1, %v4933_v48  ;;  %6150 = vst [vmem:[#allocation6_spill] sm:$0xff] %v4945_v53  ;;  %3956 = vmatmul.mubr.msk.f32.gmra.mrb[4].mxu1 %vm171_vm1, %v4913_v39  ;;  %v4965_v57 = vsel %vm735_vm4, %v751_v46, %v752_v47  ;;  %v756_v58 = vrot.slane %v4936_v50, 1  ;;  %v757_v59 = vrot.slane %v4940_v52, 1  ;;  %v4971_v61 = vld [vmem:[#allocation2 + $0x78] sm:$0xff]  ;;  %v4973_v62 = vld [vmem:[#allocation2 + $0x80] sm:$0xff]  ;;  %v759_v0 = vrot.slane %v4969_v60, 1 }
  0x38   : > { %4198 = vmatpush3.msk.msra.mxu0 %vm458_vm0, %v4818_v4  ;;  %v4957_v55 = vsel %vm735_vm4, %v747_v44, %v749_v49  ;;  %4152 = vmatprep.mubr.msk.f32.mxu0 %vm171_vm1, %v4945_v53  ;;  %6152 = vst [vmem:[#allocation8_spill] sm:$0xff] %v4965_v57  ;;  %v4984_v63 = vsel %vm735_vm4, %v752_v47, %v754_v56  ;;  %v4987_v1 = vld [vmem:[#allocation2 + $0x90] sm:$0xff]  ;;  %v4989_v2 = vld [vmem:[#allocation2 + $0x88] sm:$0x3]  ;;  %v761_v5 = vrot.slane %v4971_v61, 1  ;;  %v762_v6 = vrot.slane %v4973_v62, 1 }
  0x39   : > { %6151 = vst [vmem:[#allocation7_spill] sm:$0xff] %v4957_v55  ;;  %3958 = vmatprep.mubr.msk.f32.mxu1 %vm171_vm1, %v4916_v41  ;;  %4247 = vmatprep.subr.msk.mxu0 %vm458_vm0, %v4950_v54  ;;  %6153 = vst [vmem:[#allocation9_spill] sm:$0xff] %v4984_v63  ;;  %v4994_v4 = vsel %vm735_vm4, %v756_v58, %v757_v59  ;;  %v4998_v7 = vld [vmem:[#allocation2 + $0x98] sm:$0xff]  ;;  %v5020_v20 = vsel %vm735_vm4, %v757_v59, %v759_v0  ;;  %v764_v21 = vrot.slane %v4989_v2, 1  ;;  %v5035_v28 = vld [vmem:[#allocation2 + $0xa0] sm:$0x3] }
  0x3a   : > { %6154 = vst [vmem:[#allocation10_spill] sm:$0xff] %v4994_v4  ;;  %281 = vst.msk [vmem:[#allocation2 + $0x111] sm:$0xff] %vm171_vm1, %v248_v8  ;;  %v5031_v24 = vsel %vm735_vm4, %v761_v5, %v762_v6  ;;  %v766_v26 = vrot.slane %v4987_v1, 1  ;;  %v767_v27 = vrot.slane %v4998_v7, 1  ;;  %v5039_v29 = vld [vmem:[#allocation2 + $0xa8] sm:$0xff]  ;;  %v5041_v30 = vld [vmem:[#allocation2 + $0xb0] sm:$0xff] }
  0x3b   : > { %4153 = vmatmul.mubr.msk.f32.gmra.mrb[2].mxu0 %vm171_vm1, %v4957_v55  ;;  %3959 = vmatmul.mubr.msk.f32.gmra.mrb[6].mxu1 %vm171_vm1, %v4918_v42  ;;  %282 = vst.msk [vmem:[#allocation2 + $0x121] sm:$0xff] %vm171_vm1, %v249_v9  ;;  %283 = vst.msk [vmem:[#allocation2 + $0x129] sm:$0xff] %vm171_vm1, %v250_v10  ;;  %v258_v31 = vld [vmem:[%s4831_s26 + $0xf8] sm:$0xff]  ;;  %v5052_v35 = vsel %vm735_vm4, %v762_v6, %v764_v21  ;;  %v769_v36 = vrot.slane %v5035_v28, 1  ;;  %v771_v40 = vrot.slane %v5039_v29, 1  ;;  %v772_v44 = vrot.slane %v5041_v30, 1 }
  0x3c   : > { %4155 = vmatprep.mubr.msk.f32.mxu0 %vm171_vm1, %v4965_v57  ;;  %3961 = vmatprep.mubr.msk.f32.mxu1 %vm171_vm1, %v4936_v50  ;;  %284 = vst.msk [vmem:[#allocation2 + $0x139] sm:$0xff] %vm171_vm1, %v251_v13  ;;  %285 = vst.msk [vmem:[#allocation2 + $0x141] sm:$0xff] %vm171_vm1, %v252_v14  ;;  %v5058_v38 = vsel %vm735_vm4, %v766_v26, %v767_v27  ;;  %v5062_v46 = vld [vmem:[#allocation2 + $0xb8] sm:$0x3]  ;;  %v5064_v47 = vld [vmem:[#allocation2 + $0xc0] sm:$0xff]  ;;  %v1146_v10 = vrot.slane %v4895_v32, 2 }
  0x3d   : > { %6155 = vst [vmem:[#allocation11_spill] sm:$0xff] %v5020_v20  ;;  %286 = vst.msk [vmem:[#allocation2 + $0x151] sm:$0xff] %vm171_vm1, %v253_v16  ;;  %v5066_v49 = vld [vmem:[#allocation2 + $0xc8] sm:$0xff]  ;;  %v5075_v56 = vsel %vm735_vm4, %v767_v27, %v769_v36  ;;  %v774_v58 = vrot.slane %v5062_v46, 1  ;;  %v5081_v59 = vsel %vm735_vm4, %v771_v40, %v772_v44  ;;  %v776_v0 = vrot.slane %v5064_v47, 1  ;;  %v5104_v16 = vld [vmem:[#allocation2 + $0xd8] sm:$0xff] }
  0x3e   : > { %287 = vst.msk [vmem:[#allocation2 + $0x159] sm:$0xff] %vm171_vm1, %v254_v17  ;;  %288 = vst.msk [vmem:[#allocation2 + $0x169] sm:$0xff] %vm171_vm1, %v255_v19  ;;  %v777_v5 = vrot.slane %v5066_v49, 1  ;;  %v5085_v6 = vld [vmem:[#allocation2 + $0xd0] sm:$0x3]  ;;  %v1147_v13 = vrot.slane %v4897_v33, 2 }
  0x3f   : > { %4156 = vmatmul.mubr.msk.f32.gmra.mrb[4].mxu0 %vm171_vm1, %v4984_v63  ;;  %3962 = vmatmul.mubr.msk.f32.gmra.mrb[8].mxu1 %vm171_vm1, %v4940_v52  ;;  %6156 = vst [vmem:[#allocation12_spill] sm:$0xff] %v5031_v24  ;;  %289 = vst.msk [vmem:[#allocation2 + $0x171] sm:$0xff] %vm171_vm1, %v256_v22  ;;  %v5094_v8 = vsel %vm735_vm4, %v772_v44, %v774_v58  ;;  %v779_v9 = vrot.slane %v5085_v6, 1  ;;  %v1149_v17 = vrot.slane %v4908_v37, 2  ;;  %v5118_v21 = vld [vmem:[#allocation2 + $0xe0] sm:$0xff]  ;;  %v1151_v37 = vrot.slane %v4899_v34, 2 }
  0x40   : > { %4158 = vmatprep.mubr.msk.f32.mxu0 %vm171_vm1, %v4994_v4  ;;  %3964 = vmatprep.mubr.msk.f32.mxu1 %vm171_vm1, %v4971_v61  ;;  %290 = vst.msk [vmem:[#allocation2 + $0x181] sm:$0xff] %vm171_vm1, %v257_v23  ;;  %291 = vst.msk [vmem:[#allocation2 + $0x189] sm:$0xff] %vm171_vm1, %v258_v31  ;;  %v5102_v14 = vsel %vm735_vm4, %v776_v0, %v777_v5  ;;  %v5121_v22 = vsel %vm1140_vm3, %v1146_v10, %v1147_v13  ;;  %v5123_v23 = vld [vmem:[#allocation2 + $0xf0] sm:$0xff]  ;;  %v1152_v26 = vrot.slane %v4913_v39, 2  ;;  %v5139_v36 = vld [vmem:[#allocation2 + $0xf8] sm:$0xff] }
  0x41   : > { %6157 = vst [vmem:[#allocation13_spill] sm:$0xff] %v5052_v35  ;;  %6158 = vst [vmem:[#allocation14_spill] sm:$0xff] %v5058_v38  ;;  %v5114_v19 = vsel %vm735_vm4, %v777_v5, %v779_v9  ;;  %v5134_v27 = vsel %vm1140_vm3, %v1147_v13, %v1149_v17  ;;  %v1154_v31 = vrot.slane %v4926_v45, 2  ;;  %v1156_v40 = vrot.slane %v4916_v41, 2  ;;  %v5146_v0 = vld [vmem:[#allocation2 + $0x108] sm:$0xff]  ;;  %v5169_v13 = vld [vmem:[#allocation2 + $0x110] sm:$0xff] }
  0x42   : > { %6159 = vst [vmem:[#allocation15_spill] sm:$0xff] %v5075_v56  ;;  %6160 = vst [vmem:[#allocation16_spill] sm:$0xff] %v5081_v59  ;;  %v1157_v44 = vrot.slane %v4918_v42, 2  ;;  %v5144_v58 = vsel %vm1140_vm3, %v1151_v37, %v1152_v26  ;;  %v5153_v45 = vld [vmem:[%s6075_s1 + $0x1c] sm:$0x7]  ;;  %v1159_v9 = vrot.slane %v4938_v51, 2 }
  0x43   : > { %4159 = vmatmul.mubr.msk.f32.gmra.mrb[6].mxu0 %vm171_vm1, %v5020_v20  ;;  %3965 = vmatmul.mubr.msk.f32.gmra.mrb[10].mxu1 %vm171_vm1, %v4973_v62  ;;  %6161 = vst [vmem:[#allocation17_spill] sm:$0xff] %v5094_v8  ;;  %6162 = vst [vmem:[#allocation18_spill] sm:$0xff] %v5121_v22  ;;  %v5160_v5 = vsel %vm1140_vm3, %v1152_v26, %v1154_v31  ;;  %v5163_v10 = vld [vmem:[#allocation2 + $0x10] sm:$0x3]  ;;  %v1161_v17 = vrot.slane %v4936_v50, 2  ;;  %v1162_v37 = vrot.slane %v4940_v52, 2 }
  0x44   : > { %4161 = vmatprep.mubr.msk.f32.mxu0 %vm171_vm1, %v5031_v24  ;;  %3967 = vmatprep.mubr.msk.f32.mxu1 %vm171_vm1, %v4987_v1  ;;  %6163 = vst [vmem:[#allocation19_spill] sm:$0xff] %v5134_v27  ;;  %6164 = vst [vmem:[#allocation20_spill] sm:$0xff] %v5144_v58  ;;  %v1144_v26 = vrot.slane %v5163_v10, 2  ;;  %v5177_v51 = vld [vmem:[#allocation2 + $0x120] sm:$0xff]  ;;  %v1164_v33 = vrot.slane %v4969_v60, 2  ;;  %v5198_v32 = vld [vmem:[#allocation2 + $0x128] sm:$0xff] }
  0x45   : > { %6165 = vst [vmem:[#allocation21_spill] sm:$0xff] %v5160_v5 }
  0x46   : > { %v5186_v31 = vsel %vm1140_vm3, %v1142_v15, %v1144_v26  ;;  %v1166_v15 = vrot.slane %v4971_v61, 2  ;;  %v1167_v26 = vrot.slane %v4973_v62, 2  ;;  %v5214_v60 = vsel %vm1140_vm3, %v1162_v37, %v1164_v33  ;;  %v5263_v11 = vld [vmem:[#allocation2 + $0x170] sm:$0xff] }
  0x47   : > { %4162 = vmatmul.mubr.msk.f32.gmra.mrb[8].mxu0 %vm171_vm1, %v5052_v35  ;;  %3968 = vmatmul.mubr.msk.f32.gmra.mrb[12].mxu1 %vm171_vm1, %v4998_v7  ;;  %6169 = vst [vmem:[#allocation25_spill] sm:$0xff] %v5214_v60  ;;  %6174 = vst [vmem:[#allocation30_spill] sm:$0xff] %v5263_v11 }
  0x48   : > { %4164 = vmatprep.mubr.msk.f32.mxu0 %vm171_vm1, %v5058_v38  ;;  %3970 = vmatprep.mubr.msk.f32.mxu1 %vm171_vm1, %v5039_v29 }
  0x4b   : > { %4165 = vmatmul.mubr.msk.f32.gmra.mrb[10].mxu0 %vm171_vm1, %v5075_v56  ;;  %3971 = vmatmul.mubr.msk.f32.gmra.mrb[14].mxu1 %vm171_vm1, %v5041_v30 }
  0x4c   : > { %4167 = vmatprep.mubr.msk.f32.mxu0 %vm171_vm1, %v5081_v59  ;;  %3973 = vmatprep.mubr.msk.f32.mxu1 %vm171_vm1, %v5064_v47 }
  0x4f   : > { %4168 = vmatmul.mubr.msk.f32.gmra.mrb[12].mxu0 %vm171_vm1, %v5094_v8  ;;  %3974 = vmatmul.mubr.msk.f32.gmra.mrb[16].mxu1 %vm171_vm1, %v5066_v49 }
  0x50   : > { %4170 = vmatprep.mubr.msk.f32.mxu0 %vm171_vm1, %v5102_v14  ;;  %3976 = vmatprep.mubr.msk.f32.mxu1 %vm171_vm1, %v5104_v16 }
  0x53   : > { %4171 = vmatmul.mubr.msk.f32.gmra.mrb[14].mxu0 %vm171_vm1, %v5114_v19  ;;  %3977 = vmatmul.mubr.msk.f32.gmra.mrb[18].mxu1 %vm171_vm1, %v5118_v21 }
  0x54   : > { %4199 = vmatprep.mubr.msk.f32.mxu0 %vm171_vm1, %v5121_v22  ;;  %3979 = vmatprep.mubr.msk.f32.mxu1 %vm171_vm1, %v5123_v23  ;;  %v1182_v22 = vrot.slane %v5066_v49, 2 }
  0x57   : > { %4200 = vmatmul.mubr.msk.f32.vlgmr.msra.gmra.mrb[0].mxu0 %vm171_vm1, %v5134_v27  ;;  %3980 = vmatmul.mubr.msk.f32.gmra.mrb[20].mxu1 %vm171_vm1, %v5139_v36  ;;  %v5226_v27 = vld [vmem:[#allocation2 + $0x150] sm:$0xff] }
  0x58   : > { %4248 = vmatpush3.msk.msra.mxu0 %vm458_vm0, %v4950_v54  ;;  %4202 = vmatprep.mubr.msk.f32.mxu0 %vm171_vm1, %v5144_v58  ;;  %v5172_v54 = vsel %vm1140_vm3, %v1156_v40, %v1157_v44  ;;  %v5193_v40 = vsel %vm1140_vm3, %v1157_v44, %v1159_v9  ;;  %v5205_v58 = vld [vmem:[#allocation2 + $0x138] sm:$0xff]  ;;  %v1169_v44 = vrot.slane %v4989_v2, 2  ;;  %v5219_v9 = vld [vmem:[#allocation2 + $0x140] sm:$0xff]  ;;  %v1174_v2 = vrot.slane %v5035_v28, 2 }
  0x59   : > { %3982 = vmatprep.mubr.msk.f32.mxu1 %vm171_vm1, %v5146_v0  ;;  %6166 = vst [vmem:[#allocation22_spill] sm:$0xff] %v5172_v54  ;;  %4297 = vmatprep.subr.msk.mxu0 %vm458_vm0, %v5153_v45  ;;  %6167 = vst [vmem:[#allocation23_spill] sm:$0xff] %v5193_v40 }
  0x5a   : > { %v5235_v33 = vsel %vm1140_vm3, %v1167_v26, %v1169_v44  ;;  %v739_v44 = vrot.slane %v5163_v10, 1  ;;  %v1184_v10 = vrot.slane %v5085_v6, 2  ;;  %v5296_v6 = vld [vmem:[%s6075_s1 + $0xc] sm:$0x7] }
  0x5b   : > { %4203 = vmatmul.mubr.msk.f32.gmra.mrb[2].mxu0 %vm171_vm1, %v5160_v5  ;;  %3983 = vmatmul.mubr.msk.f32.gmra.mrb[22].mxu1 %vm171_vm1, %v5169_v13  ;;  %v5201_v5 = vsel %vm1140_vm3, %v1161_v17, %v1162_v37  ;;  %v5222_v17 = vsel %vm1140_vm3, %v1166_v15, %v1167_v26  ;;  %6171 = vst [vmem:[#allocation27_spill] sm:$0xff] %v5235_v33  ;;  %v5240_v37 = vld [vmem:[#allocation2 + $0x158] sm:$0xff]  ;;  %v5249_v26 = vld [vmem:[#allocation2 + $0x168] sm:$0xff] }
  0x5c   : > { %4205 = vmatprep.mubr.msk.f32.mxu0 %vm171_vm1, %v5172_v54  ;;  %3985 = vmatprep.mubr.msk.f32.mxu1 %vm171_vm1, %v5177_v51  ;;  %6168 = vst [vmem:[#allocation24_spill] sm:$0xff] %v5201_v5  ;;  %6170 = vst [vmem:[#allocation26_spill] sm:$0xff] %v5222_v17  ;;  %v1172_v54 = vrot.slane %v4998_v7, 2 }
  0x5e   : > { %v5258_v28 = vsel %vm1140_vm3, %v1172_v54, %v1174_v2  ;;  %v1187_v2 = vrot.slane %v5118_v21, 2 }
  0x5f   : > { %4206 = vmatmul.mubr.msk.f32.gmra.mrb[4].mxu0 %vm171_vm1, %v5193_v40  ;;  %3986 = vmatmul.mubr.msk.f32.gmra.mrb[24].mxu1 %vm171_vm1, %v5198_v32  ;;  %v1171_v40 = vrot.slane %v4987_v1, 2  ;;  %6173 = vst [vmem:[#allocation29_spill] sm:$0xff] %v5258_v28 }
  0x60   : > { %4208 = vmatprep.mubr.msk.f32.mxu0 %vm171_vm1, %v5201_v5  ;;  %3988 = vmatprep.mubr.msk.f32.mxu1 %vm171_vm1, %v5205_v58  ;;  %v1177_v5 = vrot.slane %v5041_v30, 2 }
  0x61   : > { %v5243_v15 = vsel %vm1140_vm3, %v1171_v40, %v1172_v54  ;;  %v1179_v40 = vrot.slane %v5062_v46, 2 }
  0x62   : > { %6172 = vst [vmem:[#allocation28_spill] sm:$0xff] %v5243_v15 }
  0x63   : > { %4209 = vmatmul.mubr.msk.f32.gmra.mrb[6].mxu0 %vm171_vm1, %v5214_v60  ;;  %3989 = vmatmul.mubr.msk.f32.gmra.mrb[26].mxu1 %vm171_vm1, %v5219_v9  ;;  %v1176_v60 = vrot.slane %v5039_v29, 2  ;;  %v5279_v46 = vsel %vm1140_vm3, %v1177_v5, %v1179_v40  ;;  %v1192_v40 = vrot.slane %v5139_v36, 2 }
  0x64   : > { %4211 = vmatprep.mubr.msk.f32.mxu0 %vm171_vm1, %v5222_v17  ;;  %3991 = vmatprep.mubr.msk.f32.mxu1 %vm171_vm1, %v5226_v27  ;;  %v737_v17 = vrot.slane %v4844_v12, 1  ;;  %6176 = vst [vmem:[#allocation32_spill] sm:$0xff] %v5279_v46 }
  0x65   : > { %v5266_v12 = vsel %vm1140_vm3, %v1176_v60, %v1177_v5  ;;  %v1186_v60 = vrot.slane %v5104_v16, 2  ;;  %v5302_v5 = vsel %vm1140_vm3, %v1182_v22, %v1184_v10  ;;  %v1196_v10 = vrot.slane %v5146_v0, 2 }
  0x66   : > { %6175 = vst [vmem:[#allocation31_spill] sm:$0xff] %v5266_v12  ;;  %v740_v54 = vsel %vm735_vm4, %v737_v17, %v739_v44  ;;  %6178 = vst [vmem:[#allocation34_spill] sm:$0xff] %v5302_v5  ;;  %v5314_v44 = vld [vmem:[#allocation2 + $0x100] sm:$0x3] }
  0x67   : > { %4212 = vmatmul.mubr.msk.f32.gmra.mrb[8].mxu0 %vm171_vm1, %v5235_v33  ;;  %3992 = vmatmul.mubr.msk.f32.gmra.mrb[28].mxu1 %vm171_vm1, %v5240_v37  ;;  %v1181_v33 = vrot.slane %v5064_v47, 2 }
  0x68   : > { %4214 = vmatprep.mubr.msk.f32.mxu0 %vm171_vm1, %v5243_v15  ;;  %3994 = vmatprep.mubr.msk.f32.mxu1 %vm171_vm1, %v5249_v26  ;;  %v738_v15 = vsel %vm735_vm4, %v736_v3, %v737_v17 }
  0x69   : > { %v5285_v3 = vsel %vm1140_vm3, %v1181_v33, %v1182_v22  ;;  %v5310_v33 = vsel %vm1140_vm3, %v1186_v60, %v1187_v2  ;;  %v5335_v60 = vld [vmem:[#allocation2 + $0x118] sm:$0x3] }
  0x6a   : > { %6177 = vst [vmem:[#allocation33_spill] sm:$0xff] %v5285_v3  ;;  %6179 = vst [vmem:[#allocation35_spill] sm:$0xff] %v5310_v33 }
  0x6b   : > { %4215 = vmatmul.mubr.msk.f32.gmra.mrb[10].mxu0 %vm171_vm1, %v5258_v28  ;;  %3995 = vmatmul.mubr.msk.f32.gmra.mrb[30].mxu1 %vm171_vm1, %v5263_v11  ;;  %v5289_v28 = vld [vmem:[#allocation2 + $0xe8] sm:$0x3] }
  0x6c   : > { %4217 = vmatprep.mubr.msk.f32.mxu0 %vm171_vm1, %v5266_v12  ;;  %3999 = vmatprep.mubr.msk.f32.mxu1 %vm171_vm1, %v738_v15  ;;  %v1189_v17 = vrot.slane %v5289_v28, 2  ;;  %v1191_v15 = vrot.slane %v5123_v23, 2 }
  0x6e   : > { %v5331_v22 = vsel %vm1140_vm3, %v1191_v15, %v1192_v40  ;;  %v1201_v15 = vrot.slane %v5177_v51, 2 }
  0x6f   : > { %4218 = vmatmul.mubr.msk.f32.gmra.mrb[12].mxu0 %vm171_vm1, %v5279_v46  ;;  %4000 = vmatmul.mubr.msk.f32.vlgmr.msra.gmra.mrb[0].mxu1 %vm171_vm1, %v740_v54  ;;  %6181 = vst [vmem:[#allocation37_spill] sm:$0xff] %v5331_v22  ;;  %v1197_v54 = vrot.slane %v5169_v13, 2 }
  0x70   : > { %4220 = vmatprep.mubr.msk.f32.mxu0 %vm171_vm1, %v5285_v3  ;;  %4002 = vmatprep.mubr.msk.f32.mxu1 %vm171_vm1, %v4921_v43  ;;  %v1194_v43 = vrot.slane %v5314_v44, 2 }
  0x71   : > { %4048 = vmatpush3.msk.msra.mxu1 %vm458_vm0, %v4860_v18  ;;  %v5325_v18 = vsel %vm1140_vm3, %v1187_v2, %v1189_v17  ;;  %v1199_v2 = vrot.slane %v5335_v60, 2  ;;  %v5350_v17 = vsel %vm1140_vm3, %v1196_v10, %v1197_v54 }
  0x72   : > { %4097 = vmatprep.subr.msk.mxu1 %vm458_vm0, %v5296_v6  ;;  %6180 = vst [vmem:[#allocation36_spill] sm:$0xff] %v5325_v18  ;;  %6183 = vst [vmem:[#allocation39_spill] sm:$0xff] %v5350_v17 }
  0x73   : > { %4221 = vmatmul.mubr.msk.f32.gmra.mrb[14].mxu0 %vm171_vm1, %v5302_v5  ;;  %4003 = vmatmul.mubr.msk.f32.gmra.mrb[2].mxu1 %vm171_vm1, %v4933_v48  ;;  %v5344_v48 = vsel %vm1140_vm3, %v1192_v40, %v1194_v43  ;;  %v5363_v40 = vsel %vm1140_vm3, %v1197_v54, %v1199_v2 }
  0x74   : > { %4223 = vmatprep.mubr.msk.f32.mxu0 %vm171_vm1, %v5310_v33  ;;  %4005 = vmatprep.mubr.msk.f32.mxu1 %vm171_vm1, %v4945_v53  ;;  %6182 = vst [vmem:[#allocation38_spill] sm:$0xff] %v5344_v48  ;;  %v1202_v53 = vrot.slane %v5198_v32, 2  ;;  %6184 = vst [vmem:[#allocation40_spill] sm:$0xff] %v5363_v40 }
  0x76   : > { %v5369_v10 = vsel %vm1140_vm3, %v1201_v15, %v1202_v53 }
  0x77   : > { %4224 = vmatmul.mubr.msk.f32.gmra.mrb[16].mxu0 %vm171_vm1, %v5325_v18  ;;  %4006 = vmatmul.mubr.msk.f32.gmra.mrb[4].mxu1 %vm171_vm1, %v4957_v55  ;;  %v5354_v18 = vld [vmem:[#allocation2 + $0x130] sm:$0x3]  ;;  %6185 = vst [vmem:[#allocation41_spill] sm:$0xff] %v5369_v10  ;;  %v5373_v55 = vld [vmem:[#allocation2 + $0x148] sm:$0x3] }
  0x78   : > { %4226 = vmatprep.mubr.msk.f32.mxu0 %vm171_vm1, %v5331_v22  ;;  %4008 = vmatprep.mubr.msk.f32.mxu1 %vm171_vm1, %v4965_v57  ;;  %v1204_v43 = vrot.slane %v5354_v18, 2  ;;  %v1206_v57 = vrot.slane %v5205_v58, 2  ;;  %v1209_v2 = vrot.slane %v5373_v55, 2 }
  0x7a   : > { %v5382_v54 = vsel %vm1140_vm3, %v1202_v53, %v1204_v43 }
  0x7b   : > { %4227 = vmatmul.mubr.msk.f32.gmra.mrb[18].mxu0 %vm171_vm1, %v5344_v48  ;;  %4009 = vmatmul.mubr.msk.f32.gmra.mrb[6].mxu1 %vm171_vm1, %v4984_v63  ;;  %v1207_v48 = vrot.slane %v5219_v9, 2  ;;  %6186 = vst [vmem:[#allocation42_spill] sm:$0xff] %v5382_v54  ;;  %v5392_v63 = vld [vmem:[#allocation2 + $0x160] sm:$0x3] }
  0x7c   : > { %4229 = vmatprep.mubr.msk.f32.mxu0 %vm171_vm1, %v5350_v17  ;;  %4011 = vmatprep.mubr.msk.f32.mxu1 %vm171_vm1, %v4994_v4  ;;  %v1211_v4 = vrot.slane %v5226_v27, 2 }
  0x7d   : > { %v5388_v15 = vsel %vm1140_vm3, %v1206_v57, %v1207_v48  ;;  %v5401_v53 = vsel %vm1140_vm3, %v1207_v48, %v1209_v2  ;;  %v1214_v57 = vrot.slane %v5392_v63, 2 }
  0x7e   : > { %6187 = vst [vmem:[#allocation43_spill] sm:$0xff] %v5388_v15  ;;  %6188 = vst [vmem:[#allocation44_spill] sm:$0xff] %v5401_v53 }
  0x7f   : > { %4230 = vmatmul.mubr.msk.f32.gmra.mrb[20].mxu0 %vm171_vm1, %v5363_v40  ;;  %4012 = vmatmul.mubr.msk.f32.gmra.mrb[8].mxu1 %vm171_vm1, %v5020_v20  ;;  %v1212_v40 = vrot.slane %v5240_v37, 2  ;;  %v5411_v20 = vld [vmem:[#allocation2 + $0x178] sm:$0x3] }
  0x80   : > { %4232 = vmatprep.mubr.msk.f32.mxu0 %vm171_vm1, %v5369_v10  ;;  %4014 = vmatprep.mubr.msk.f32.mxu1 %vm171_vm1, %v5031_v24  ;;  %v1216_v24 = vrot.slane %v5249_v26, 2  ;;  %v1219_v48 = vrot.slane %v5411_v20, 2  ;;  %v5434_v10 = vld [vmem:[#allocation2 + $0x190] sm:$0x3] }
  0x81   : > { %v5407_v43 = vsel %vm1140_vm3, %v1211_v4, %v1212_v40  ;;  %v5424_v4 = vsel %vm1140_vm3, %v1212_v40, %v1214_v57  ;;  %6192 = vst [vmem:[#allocation48_spill] sm:$0xff] %v5434_v10  ;;  %v2084_v40 = vrot.slane %v5434_v10, 2  ;;  %v792_v10 = vrot.slane %v5169_v13, 1 }
  0x82   : > { %6189 = vst [vmem:[#allocation45_spill] sm:$0xff] %v5407_v43  ;;  %6190 = vst [vmem:[#allocation46_spill] sm:$0xff] %v5424_v4 }
  0x83   : > { %4233 = vmatmul.mubr.msk.f32.gmra.mrb[22].mxu0 %vm171_vm1, %v5382_v54  ;;  %4015 = vmatmul.mubr.msk.f32.gmra.mrb[10].mxu1 %vm171_vm1, %v5052_v35  ;;  %v1217_v54 = vrot.slane %v5263_v11, 2  ;;  %v5413_v35 = vld [vmem:[#allocation2 + $0x180] sm:$0xff] }
  0x84   : > { %4235 = vmatprep.mubr.msk.f32.mxu0 %vm171_vm1, %v5388_v15  ;;  %4017 = vmatprep.mubr.msk.f32.mxu1 %vm171_vm1, %v5058_v38  ;;  %v5415_v15 = vld [vmem:[#allocation2 + $0x188] sm:$0xff]  ;;  %v2081_v38 = vrot.slane %v5413_v35, 2 }
  0x85   : > { %v5430_v2 = vsel %vm1140_vm3, %v1216_v24, %v1217_v54  ;;  %v5445_v24 = vsel %vm1140_vm3, %v1217_v54, %v1219_v48  ;;  %v791_v48 = vrot.slane %v5146_v0, 1 }
  0x86   : > { %6191 = vst [vmem:[#allocation47_spill] sm:$0xff] %v5430_v2 }
  0x87   : > { %4236 = vmatmul.mubr.msk.f32.gmra.mrb[24].mxu0 %vm171_vm1, %v5401_v53  ;;  %4018 = vmatmul.mubr.msk.f32.gmra.mrb[12].mxu1 %vm171_vm1, %v5075_v56  ;;  %v2082_v53 = vrot.slane %v5415_v15, 2  ;;  %v781_v56 = vrot.slane %v5104_v16, 1 }
  0x88   : > { %4238 = vmatprep.mubr.msk.f32.mxu0 %vm171_vm1, %v5407_v43  ;;  %4020 = vmatprep.mubr.msk.f32.mxu1 %vm171_vm1, %v5081_v59  ;;  %v782_v43 = vrot.slane %v5118_v21, 1  ;;  %v784_v59 = vrot.slane %v5289_v28, 1  ;;  %v789_v28 = vrot.slane %v5314_v44, 1  ;;  %v5492_v44 = vsel %vm735_vm4, %v791_v48, %v792_v10 }
  0x89   : > { %v5451_v57 = vsel %vm1140_vm3, %v2081_v38, %v2082_v53  ;;  %v5466_v38 = vsel %vm1140_vm3, %v2082_v53, %v2084_v40  ;;  %v796_v53 = vrot.slane %v5177_v51, 1  ;;  %v5501_v40 = vld [vmem:[%s6075_s1 + $0x20] sm:$0x7]  ;;  %v801_v48 = vrot.slane %v5205_v58, 1 }
  0x8a   : > { %6193 = vst [vmem:[#allocation49_spill] sm:$0xff] %v5451_v57  ;;  %6194 = vst [vmem:[#allocation50_spill] sm:$0xff] %v5466_v38 }
  0x8b   : > { %4239 = vmatmul.mubr.msk.f32.gmra.mrb[26].mxu0 %vm171_vm1, %v5424_v4  ;;  %4021 = vmatmul.mubr.msk.f32.gmra.mrb[14].mxu1 %vm171_vm1, %v5094_v8  ;;  %v5455_v4 = vsel %vm735_vm4, %v781_v56, %v782_v43  ;;  %v786_v8 = vrot.slane %v5123_v23, 1  ;;  %v5471_v56 = vsel %vm735_vm4, %v782_v43, %v784_v59  ;;  %v797_v43 = vrot.slane %v5198_v32, 1 }
  0x8c   : > { %4241 = vmatprep.mubr.msk.f32.mxu0 %vm171_vm1, %v5430_v2  ;;  %4023 = vmatprep.mubr.msk.f32.mxu1 %vm171_vm1, %v5102_v14  ;;  %v787_v2 = vrot.slane %v5139_v36, 1 }
  0x8e   : > { %v5475_v54 = vsel %vm735_vm4, %v786_v8, %v787_v2  ;;  %v5488_v59 = vsel %vm735_vm4, %v787_v2, %v789_v28  ;;  %v794_v8 = vrot.slane %v5335_v60, 1  ;;  %v799_v2 = vrot.slane %v5354_v18, 1 }
  0x8f   : > { %4242 = vmatmul.mubr.msk.f32.gmra.mrb[28].mxu0 %vm171_vm1, %v5445_v24  ;;  %4024 = vmatmul.mubr.msk.f32.gmra.mrb[16].mxu1 %vm171_vm1, %v5114_v19  ;;  %v5516_v28 = vsel %vm735_vm4, %v796_v53, %v797_v43  ;;  %v806_v53 = vrot.slane %v5226_v27, 1 }
  0x90   : > { %4244 = vmatprep.mubr.msk.f32.mxu0 %vm171_vm1, %v5451_v57  ;;  %4026 = vmatprep.mubr.msk.f32.mxu1 %vm171_vm1, %v5455_v4  ;;  %v5512_v60 = vsel %vm735_vm4, %v792_v10, %v794_v8  ;;  %v5531_v18 = vsel %vm735_vm4, %v797_v43, %v799_v2  ;;  %v804_v10 = vrot.slane %v5373_v55, 1  ;;  %v809_v43 = vrot.slane %v5392_v63, 1 }
  0x91   : > { %v812_v57 = vrot.slane %v5263_v11, 1 }
  0x93   : > { %4245 = vmatmul.mubr.msk.f32.gmra.mrb[30].mxu0 %vm171_vm1, %v5466_v38  ;;  %4027 = vmatmul.mubr.msk.f32.gmra.mrb[18].mxu1 %vm171_vm1, %v5471_v56  ;;  %v807_v38 = vrot.slane %v5240_v37, 1 }
  0x94   : > { %4249 = vmatprep.mubr.msk.f32.mxu0 %vm171_vm1, %v4899_v34  ;;  %4029 = vmatprep.mubr.msk.f32.mxu1 %vm171_vm1, %v5475_v54 }
  0x95   : > { %v5552_v2 = vsel %vm735_vm4, %v806_v53, %v807_v38  ;;  %v5565_v63 = vsel %vm735_vm4, %v807_v38, %v809_v43  ;;  %v6199_v53 = vld [vmem:[#allocation21_spill] sm:$0xff]  ;;  %v6201_v43 = vld [vmem:[#allocation23_spill] sm:$0xff] }
  0x97   : > { %4250 = vmatmul.mubr.msk.f32.vlgmr.msra.gmra.mrb[0].mxu0 %vm171_vm1, %v4913_v39  ;;  %4030 = vmatmul.mubr.msk.f32.gmra.mrb[20].mxu1 %vm171_vm1, %v5488_v59 }
  0x98   : > { %4298 = vmatpush3.msk.msra.mxu0 %vm458_vm0, %v5153_v45  ;;  %4252 = vmatprep.mubr.msk.f32.mxu0 %vm171_vm1, %v4916_v41  ;;  %v802_v45 = vrot.slane %v5219_v9, 1 }
  0x99   : > { %4032 = vmatprep.mubr.msk.f32.mxu1 %vm171_vm1, %v5492_v44  ;;  %4347 = vmatprep.subr.msk.mxu0 %vm458_vm0, %v5501_v40 }
  0x9a   : > { %v5535_v8 = vsel %vm735_vm4, %v801_v48, %v802_v45  ;;  %v5548_v55 = vsel %vm735_vm4, %v802_v45, %v804_v10  ;;  %v811_v48 = vrot.slane %v5249_v26, 1  ;;  %v814_v45 = vrot.slane %v5411_v20, 1  ;;  %v6195_v20 = vld [vmem:[#allocation18_spill] sm:$0xff] }
  0x9b   : > { %4253 = vmatmul.mubr.msk.f32.gmra.mrb[2].mxu0 %vm171_vm1, %v4918_v42  ;;  %4033 = vmatmul.mubr.msk.f32.gmra.mrb[22].mxu1 %vm171_vm1, %v5512_v60 }
  0x9c   : > { %4255 = vmatprep.mubr.msk.f32.mxu0 %vm171_vm1, %v4936_v50  ;;  %4035 = vmatprep.mubr.msk.f32.mxu1 %vm171_vm1, %v5516_v28  ;;  %v5569_v10 = vsel %vm735_vm4, %v811_v48, %v812_v57  ;;  %v5580_v38 = vsel %vm735_vm4, %v812_v57, %v814_v45  ;;  %v6196_v57 = vld [vmem:[#allocation3_spill] sm:$0xff]  ;;  %v6202_v48 = vld [vmem:[#allocation24_spill] sm:$0xff]  ;;  %v6203_v45 = vld [vmem:[#allocation25_spill] sm:$0xff] }
  0x9f   : > { %4256 = vmatmul.mubr.msk.f32.gmra.mrb[4].mxu0 %vm171_vm1, %v4940_v52  ;;  %4036 = vmatmul.mubr.msk.f32.gmra.mrb[24].mxu1 %vm171_vm1, %v5531_v18 }
  0xa0   : > { %4258 = vmatprep.mubr.msk.f32.mxu0 %vm171_vm1, %v4971_v61  ;;  %4038 = vmatprep.mubr.msk.f32.mxu1 %vm171_vm1, %v5535_v8 }
  0xa3   : > { %4259 = vmatmul.mubr.msk.f32.gmra.mrb[6].mxu0 %vm171_vm1, %v4973_v62  ;;  %4039 = vmatmul.mubr.msk.f32.gmra.mrb[26].mxu1 %vm171_vm1, %v5548_v55 }
  0xa4   : > { %4261 = vmatprep.mubr.msk.f32.mxu0 %vm171_vm1, %v4987_v1  ;;  %4041 = vmatprep.mubr.msk.f32.mxu1 %vm171_vm1, %v5552_v2 }
  0xa7   : > { %4262 = vmatmul.mubr.msk.f32.gmra.mrb[8].mxu0 %vm171_vm1, %v4998_v7  ;;  %4042 = vmatmul.mubr.msk.f32.gmra.mrb[28].mxu1 %vm171_vm1, %v5565_v63 }
  0xa8   : > { %4264 = vmatprep.mubr.msk.f32.mxu0 %vm171_vm1, %v5039_v29  ;;  %4044 = vmatprep.mubr.msk.f32.mxu1 %vm171_vm1, %v5569_v10 }
  0xab   : > { %4265 = vmatmul.mubr.msk.f32.gmra.mrb[10].mxu0 %vm171_vm1, %v5041_v30  ;;  %4045 = vmatmul.mubr.msk.f32.gmra.mrb[30].mxu1 %vm171_vm1, %v5580_v38 }
  0xac   : > { %4267 = vmatprep.mubr.msk.f32.mxu0 %vm171_vm1, %v5064_v47  ;;  %4049 = vmatprep.mubr.msk.f32.mxu1 %vm171_vm1, %v4879_v25  ;;  %v6197_v25 = vld [vmem:[#allocation19_spill] sm:$0xff] }
  0xaf   : > { %4268 = vmatmul.mubr.msk.f32.gmra.mrb[12].mxu0 %vm171_vm1, %v5066_v49  ;;  %4050 = vmatmul.mubr.msk.f32.vlgmr.msra.gmra.mrb[0].mxu1 %vm171_vm1, %v5186_v31  ;;  %v6198_v31 = vld [vmem:[#allocation20_spill] sm:$0xff] }
  0xb0   : > { %4270 = vmatprep.mubr.msk.f32.mxu0 %vm171_vm1, %v5104_v16  ;;  %4052 = vmatprep.mubr.msk.f32.mxu1 %vm171_vm1, %v6195_v20  ;;  %v6204_v20 = vld [vmem:[#allocation26_spill] sm:$0xff] }
  0xb1   : > { %4098 = vmatpush3.msk.msra.mxu1 %vm458_vm0, %v5296_v6  ;;  %v6200_v6 = vld [vmem:[#allocation22_spill] sm:$0xff] }
  0xb2   : > { %4397 = vmatprep.subr.msk.mxu1 %vm458_vm0, %v6196_v57  ;;  %v6205_v57 = vld [vmem:[#allocation27_spill] sm:$0xff] }
  0xb3   : > { %4271 = vmatmul.mubr.msk.f32.gmra.mrb[14].mxu0 %vm171_vm1, %v5118_v21  ;;  %4053 = vmatmul.mubr.msk.f32.gmra.mrb[2].mxu1 %vm171_vm1, %v6197_v25  ;;  %v6206_v25 = vld [vmem:[#allocation28_spill] sm:$0xff] }
  0xb4   : > { %4273 = vmatprep.mubr.msk.f32.mxu0 %vm171_vm1, %v5123_v23  ;;  %4055 = vmatprep.mubr.msk.f32.mxu1 %vm171_vm1, %v6198_v31 }
  0xb7   : > { %4274 = vmatmul.mubr.msk.f32.gmra.mrb[16].mxu0 %vm171_vm1, %v5139_v36  ;;  %4056 = vmatmul.mubr.msk.f32.gmra.mrb[4].mxu1 %vm171_vm1, %v6199_v53 }
  0xb8   : > { %4276 = vmatprep.mubr.msk.f32.mxu0 %vm171_vm1, %v5146_v0  ;;  %4058 = vmatprep.mubr.msk.f32.mxu1 %vm171_vm1, %v6200_v6 }
  0xbb   : > { %4277 = vmatmul.mubr.msk.f32.gmra.mrb[18].mxu0 %vm171_vm1, %v5169_v13  ;;  %4059 = vmatmul.mubr.msk.f32.gmra.mrb[6].mxu1 %vm171_vm1, %v6201_v43 }
  0xbc   : > { %4279 = vmatprep.mubr.msk.f32.mxu0 %vm171_vm1, %v5177_v51  ;;  %4061 = vmatprep.mubr.msk.f32.mxu1 %vm171_vm1, %v6202_v48 }
  0xbf   : > { %4280 = vmatmul.mubr.msk.f32.gmra.mrb[20].mxu0 %vm171_vm1, %v5198_v32  ;;  %4062 = vmatmul.mubr.msk.f32.gmra.mrb[8].mxu1 %vm171_vm1, %v6203_v45  ;;  %v6207_v45 = vld [vmem:[#allocation29_spill] sm:$0xff] }
  0xc0   : > { %4282 = vmatprep.mubr.msk.f32.mxu0 %vm171_vm1, %v5205_v58  ;;  %4064 = vmatprep.mubr.msk.f32.mxu1 %vm171_vm1, %v6204_v20 }
  0xc3   : > { %4283 = vmatmul.mubr.msk.f32.gmra.mrb[22].mxu0 %vm171_vm1, %v5219_v9  ;;  %4065 = vmatmul.mubr.msk.f32.gmra.mrb[10].mxu1 %vm171_vm1, %v6205_v57 }
  0xc4   : > { %4285 = vmatprep.mubr.msk.f32.mxu0 %vm171_vm1, %v5226_v27  ;;  %4067 = vmatprep.mubr.msk.f32.mxu1 %vm171_vm1, %v6206_v25  ;;  %v5658_v25 = vld [vmem:[#allocation2 + $0x198] sm:$0xff] }
  0xc7   : > { %4286 = vmatmul.mubr.msk.f32.gmra.mrb[24].mxu0 %vm171_vm1, %v5240_v37  ;;  %4068 = vmatmul.mubr.msk.f32.gmra.mrb[12].mxu1 %vm171_vm1, %v6207_v45 }
  0xc8   : > { %4288 = vmatprep.mubr.msk.f32.mxu0 %vm171_vm1, %v5249_v26  ;;  %4070 = vmatprep.mubr.msk.f32.mxu1 %vm171_vm1, %v5266_v12  ;;  %v5666_v12 = vld [vmem:[#allocation2 + $0x1a0] sm:$0xff] }
  0xcb   : > { %4289 = vmatmul.mubr.msk.f32.gmra.mrb[26].mxu0 %vm171_vm1, %v5263_v11  ;;  %4071 = vmatmul.mubr.msk.f32.gmra.mrb[14].mxu1 %vm171_vm1, %v5279_v46  ;;  %v6209_v46 = vld [vmem:[#allocation6_spill] sm:$0xff] }
  0xcc   : > { %4291 = vmatprep.mubr.msk.f32.mxu0 %vm171_vm1, %v5413_v35  ;;  %4073 = vmatprep.mubr.msk.f32.mxu1 %vm171_vm1, %v5285_v3  ;;  %v6208_v3 = vld [vmem:[#allocation36_spill] sm:$0xff]  ;;  %v6211_v11 = vld [vmem:[#allocation38_spill] sm:$0xff] }
  0xcf   : > { %4292 = vmatmul.mubr.msk.f32.gmra.mrb[28].mxu0 %vm171_vm1, %v5415_v15  ;;  %4074 = vmatmul.mubr.msk.f32.gmra.mrb[16].mxu1 %vm171_vm1, %v5302_v5  ;;  %v6210_v5 = vld [vmem:[#allocation7_spill] sm:$0xff] }
  0xd0   : > { %4294 = vmatprep.mubr.msk.f32.mxu0 %vm171_vm1, %v5658_v25  ;;  %4076 = vmatprep.mubr.msk.f32.mxu1 %vm171_vm1, %v5310_v33  ;;  %v6212_v33 = vld [vmem:[#allocation8_spill] sm:$0xff] }
  0xd3   : > { %4295 = vmatmul.mubr.msk.f32.gmra.mrb[30].mxu0 %vm171_vm1, %v5666_v12  ;;  %4077 = vmatmul.mubr.msk.f32.gmra.mrb[18].mxu1 %vm171_vm1, %v6208_v3  ;;  %v6213_v3 = vld [vmem:[#allocation9_spill] sm:$0xff] }
  0xd4   : > { %4299 = vmatprep.mubr.msk.f32.mxu0 %vm171_vm1, %v6209_v46  ;;  %4079 = vmatprep.mubr.msk.f32.mxu1 %vm171_vm1, %v5331_v22  ;;  %v6214_v46 = vld [vmem:[#allocation40_spill] sm:$0xff]  ;;  %v6215_v22 = vld [vmem:[#allocation10_spill] sm:$0xff] }
  0xd7   : > { %4300 = vmatmul.mubr.msk.f32.vlgmr.msra.gmra.mrb[0].mxu0 %vm171_vm1, %v6210_v5  ;;  %4080 = vmatmul.mubr.msk.f32.gmra.mrb[20].mxu1 %vm171_vm1, %v6211_v11  ;;  %v6216_v5 = vld [vmem:[#allocation41_spill] sm:$0xff]  ;;  %v6218_v11 = vld [vmem:[#allocation42_spill] sm:$0xff] }
  0xd8   : > { %4348 = vmatpush3.msk.msra.mxu0 %vm458_vm0, %v5501_v40  ;;  %4302 = vmatprep.mubr.msk.f32.mxu0 %vm171_vm1, %v6212_v33  ;;  %v6217_v40 = vld [vmem:[#allocation11_spill] sm:$0xff]  ;;  %v6219_v33 = vld [vmem:[#allocation12_spill] sm:$0xff] }
  0xd9   : > { %4082 = vmatprep.mubr.msk.f32.mxu1 %vm171_vm1, %v5350_v17  ;;  %v6220_v17 = vld [vmem:[#allocation43_spill] sm:$0xff] }
  0xdb   : > { %4303 = vmatmul.mubr.msk.f32.gmra.mrb[2].mxu0 %vm171_vm1, %v6213_v3  ;;  %4083 = vmatmul.mubr.msk.f32.gmra.mrb[22].mxu1 %vm171_vm1, %v6214_v46  ;;  %v6221_v3 = vld [vmem:[#allocation13_spill] sm:$0xff]  ;;  %v6222_v46 = vld [vmem:[#allocation44_spill] sm:$0xff] }
  0xdc   : > { %4305 = vmatprep.mubr.msk.f32.mxu0 %vm171_vm1, %v6215_v22  ;;  %4085 = vmatprep.mubr.msk.f32.mxu1 %vm171_vm1, %v6216_v5  ;;  %v6223_v22 = vld [vmem:[#allocation14_spill] sm:$0xff]  ;;  %v6224_v5 = vld [vmem:[#allocation45_spill] sm:$0xff] }
  0xdf   : > { %4306 = vmatmul.mubr.msk.f32.gmra.mrb[4].mxu0 %vm171_vm1, %v6217_v40  ;;  %4086 = vmatmul.mubr.msk.f32.gmra.mrb[24].mxu1 %vm171_vm1, %v6218_v11  ;;  %v6225_v40 = vld [vmem:[#allocation15_spill] sm:$0xff]  ;;  %v6226_v11 = vld [vmem:[#allocation46_spill] sm:$0xff] }
  0xe0   : > { %4308 = vmatprep.mubr.msk.f32.mxu0 %vm171_vm1, %v6219_v33  ;;  %4088 = vmatprep.mubr.msk.f32.mxu1 %vm171_vm1, %v6220_v17  ;;  %v6227_v33 = vld [vmem:[#allocation16_spill] sm:$0xff]  ;;  %v6228_v17 = vld [vmem:[#allocation47_spill] sm:$0xff] }
  0xe3   : > { %4309 = vmatmul.mubr.msk.f32.gmra.mrb[6].mxu0 %vm171_vm1, %v6221_v3  ;;  %4089 = vmatmul.mubr.msk.f32.gmra.mrb[26].mxu1 %vm171_vm1, %v6222_v46  ;;  %v6229_v3 = vld [vmem:[#allocation17_spill] sm:$0xff] }
  0xe4   : > { %4311 = vmatprep.mubr.msk.f32.mxu0 %vm171_vm1, %v6223_v22  ;;  %4091 = vmatprep.mubr.msk.f32.mxu1 %vm171_vm1, %v6224_v5  ;;  %v6230_v22 = vld [vmem:[#allocation4_spill] sm:$0xff] }
  0xe7   : > { %4312 = vmatmul.mubr.msk.f32.gmra.mrb[8].mxu0 %vm171_vm1, %v6225_v40  ;;  %4092 = vmatmul.mubr.msk.f32.gmra.mrb[28].mxu1 %vm171_vm1, %v6226_v11  ;;  %v6231_v40 = vld [vmem:[#allocation5_spill] sm:$0xff] }
  0xe8   : > { %4314 = vmatprep.mubr.msk.f32.mxu0 %vm171_vm1, %v6227_v33  ;;  %4094 = vmatprep.mubr.msk.f32.mxu1 %vm171_vm1, %v6228_v17  ;;  %v4696_v33 = vld [vmem:[%s6075_s1 + $0x10] sm:$0x7] }
  0xeb   : > { %4315 = vmatmul.mubr.msk.f32.gmra.mrb[10].mxu0 %vm171_vm1, %v6229_v3  ;;  %4095 = vmatmul.mubr.msk.f32.gmra.mrb[30].mxu1 %vm171_vm1, %v5445_v24 }
  0xec   : > { %4317 = vmatprep.mubr.msk.f32.mxu0 %vm171_vm1, %v5102_v14  ;;  %4099 = vmatprep.mubr.msk.f32.mxu1 %vm171_vm1, %v6230_v22  ;;  %v6236_v14 = vld [vmem:[#allocation31_spill] sm:$0xff] }
  0xef   : > { %4318 = vmatmul.mubr.msk.f32.gmra.mrb[12].mxu0 %vm171_vm1, %v5114_v19  ;;  %4100 = vmatmul.mubr.msk.f32.vlgmr.msra.gmra.mrb[0].mxu1 %vm171_vm1, %v6231_v40  ;;  %v6238_v19 = vld [vmem:[#allocation33_spill] sm:$0xff] }
  0xf0   : > { %4320 = vmatprep.mubr.msk.f32.mxu0 %vm171_vm1, %v5455_v4  ;;  %4102 = vmatprep.mubr.msk.f32.mxu1 %vm171_vm1, %v4899_v34  ;;  %v1812_v34 = vrot.slane %v5413_v35, 1 }
  0xf1   : > { %4398 = vmatpush3.msk.msra.mxu1 %vm458_vm0, %v4696_v33 }
  0xf3   : > { %4321 = vmatmul.mubr.msk.f32.gmra.mrb[14].mxu0 %vm171_vm1, %v5471_v56  ;;  %4103 = vmatmul.mubr.msk.f32.gmra.mrb[2].mxu1 %vm171_vm1, %v4913_v39  ;;  %v1813_v39 = vrot.slane %v5415_v15, 1 }
  0xf4   : > { %4323 = vmatprep.mubr.msk.f32.mxu0 %vm171_vm1, %v5475_v54  ;;  %4105 = vmatprep.mubr.msk.f32.mxu1 %vm171_vm1, %v4916_v41  ;;  %v6232_v41 = vld [vmem:[#allocation48_spill] sm:$0xff] }
  0xf7   : > { %4324 = vmatmul.mubr.msk.f32.gmra.mrb[16].mxu0 %vm171_vm1, %v5488_v59  ;;  %4106 = vmatmul.mubr.msk.f32.gmra.mrb[4].mxu1 %vm171_vm1, %v4918_v42  ;;  %v1815_v42 = vrot.slane %v6232_v41, 1 }
  0xf8   : > { %4326 = vmatprep.mubr.msk.f32.mxu0 %vm171_vm1, %v5492_v44  ;;  %4108 = vmatprep.mubr.msk.f32.mxu1 %vm171_vm1, %v4936_v50  ;;  %v2617_v50 = vrot.slane %v5658_v25, 1 }
  0xfb   : > { %4327 = vmatmul.mubr.msk.f32.gmra.mrb[18].mxu0 %vm171_vm1, %v5512_v60  ;;  %4109 = vmatmul.mubr.msk.f32.gmra.mrb[6].mxu1 %vm171_vm1, %v4940_v52  ;;  %v2618_v52 = vrot.slane %v5666_v12, 1 }
  0xfc   : > { %4329 = vmatprep.mubr.msk.f32.mxu0 %vm171_vm1, %v5516_v28  ;;  %4111 = vmatprep.mubr.msk.f32.mxu1 %vm171_vm1, %v4971_v61  ;;  %v5794_v61 = vsel %vm735_vm4, %v1812_v34, %v1813_v39 }
  0xff   : > { %4330 = vmatmul.mubr.msk.f32.gmra.mrb[20].mxu0 %vm171_vm1, %v5531_v18  ;;  %4112 = vmatmul.mubr.msk.f32.gmra.mrb[8].mxu1 %vm171_vm1, %v4973_v62  ;;  %v5796_v62 = vld [vmem:[#allocation2 + $0x1a8] sm:$0x3] }
 0x100   : > { %4332 = vmatprep.mubr.msk.f32.mxu0 %vm171_vm1, %v5535_v8  ;;  %4114 = vmatprep.mubr.msk.f32.mxu1 %vm171_vm1, %v4987_v1  ;;  %v5805_v1 = vsel %vm735_vm4, %v1813_v39, %v1815_v42 }
 0x103   : > { %4333 = vmatmul.mubr.msk.f32.gmra.mrb[22].mxu0 %vm171_vm1, %v5548_v55  ;;  %4115 = vmatmul.mubr.msk.f32.gmra.mrb[10].mxu1 %vm171_vm1, %v4998_v7  ;;  %v2620_v7 = vrot.slane %v5796_v62, 1 }
 0x104   : > { %4335 = vmatprep.mubr.msk.f32.mxu0 %vm171_vm1, %v5552_v2  ;;  %4117 = vmatprep.mubr.msk.f32.mxu1 %vm171_vm1, %v5039_v29  ;;  %v2619_v29 = vsel %vm735_vm4, %v2617_v50, %v2618_v52 }
 0x107   : > { %4336 = vmatmul.mubr.msk.f32.gmra.mrb[24].mxu0 %vm171_vm1, %v5565_v63  ;;  %4118 = vmatmul.mubr.msk.f32.gmra.mrb[12].mxu1 %vm171_vm1, %v5041_v30  ;;  %v2621_v30 = vsel %vm735_vm4, %v2618_v52, %v2620_v7 }
 0x108   : > { %4338 = vmatprep.mubr.msk.f32.mxu0 %vm171_vm1, %v5569_v10  ;;  %4120 = vmatprep.mubr.msk.f32.mxu1 %vm171_vm1, %v5064_v47  ;;  %v6233_v47 = vld [vmem:[#allocation25_spill] sm:$0xff] }
 0x10b   : > { %4339 = vmatmul.mubr.msk.f32.gmra.mrb[26].mxu0 %vm171_vm1, %v5580_v38  ;;  %4121 = vmatmul.mubr.msk.f32.gmra.mrb[14].mxu1 %vm171_vm1, %v5066_v49  ;;  %v6235_v49 = vld [vmem:[#allocation30_spill] sm:$0xff] }
 0x10c   : > { %4341 = vmatprep.mubr.msk.f32.mxu0 %vm171_vm1, %v5794_v61  ;;  %4123 = vmatprep.mubr.msk.f32.mxu1 %vm171_vm1, %v5104_v16  ;;  %v6237_v16 = vld [vmem:[#allocation32_spill] sm:$0xff] }
 0x10f   : > { %4342 = vmatmul.mubr.msk.f32.gmra.mrb[28].mxu0 %vm171_vm1, %v5805_v1  ;;  %4124 = vmatmul.mubr.msk.f32.gmra.mrb[16].mxu1 %vm171_vm1, %v5118_v21  ;;  %v6239_v21 = vld [vmem:[#allocation34_spill] sm:$0xff] }
 0x110   : > { %4344 = vmatprep.mubr.msk.f32.mxu0 %vm171_vm1, %v2619_v29  ;;  %4126 = vmatprep.mubr.msk.f32.mxu1 %vm171_vm1, %v5123_v23  ;;  %v6240_v23 = vld [vmem:[#allocation35_spill] sm:$0xff] }
 0x113   : > { %4345 = vmatmul.mubr.msk.f32.gmra.mrb[30].mxu0 %vm171_vm1, %v2621_v30  ;;  %4127 = vmatmul.mubr.msk.f32.gmra.mrb[18].mxu1 %vm171_vm1, %v5139_v36  ;;  %v6243_v36 = vld [vmem:[#allocation38_spill] sm:$0xff] }
 0x114   : > { %4349 = vmatprep.mubr.msk.f32.mxu0 %vm171_vm1, %v6198_v31  ;;  %4129 = vmatprep.mubr.msk.f32.mxu1 %vm171_vm1, %v5146_v0  ;;  %v6245_v0 = vld [vmem:[#allocation40_spill] sm:$0xff] }
 0x117   : > { %4350 = vmatmul.mubr.msk.f32.vlgmr.msra.gmra.mrb[0].mxu0 %vm171_vm1, %v6199_v53  ;;  %4130 = vmatmul.mubr.msk.f32.gmra.mrb[20].mxu1 %vm171_vm1, %v5169_v13  ;;  %v6246_v13 = vld [vmem:[#allocation41_spill] sm:$0xff] }
 0x118   : > { %4352 = vmatprep.mubr.msk.f32.mxu0 %vm171_vm1, %v6200_v6  ;;  %4132 = vmatprep.mubr.msk.f32.mxu1 %vm171_vm1, %v5177_v51  ;;  %v6247_v51 = vld [vmem:[#allocation42_spill] sm:$0xff]  ;;  %v5960_v6 = vld [vmem:[%s6076_s2] ss:$0 sm:$0xff] }
 0x11b   : > { %4353 = vmatmul.mubr.msk.f32.gmra.mrb[2].mxu0 %vm171_vm1, %v6201_v43  ;;  %4133 = vmatmul.mubr.msk.f32.gmra.mrb[22].mxu1 %vm171_vm1, %v5198_v32  ;;  %v6234_v32 = vld [vmem:[#allocation28_spill] sm:$0xff] }
 0x11c   : > { %4355 = vmatprep.mubr.msk.f32.mxu0 %vm171_vm1, %v6202_v48  ;;  %4135 = vmatprep.mubr.msk.f32.mxu1 %vm171_vm1, %v5205_v58  ;;  %v6244_v58 = vld [vmem:[#allocation39_spill] sm:$0xff] }
 0x11f   : > { %4356 = vmatmul.mubr.msk.f32.gmra.mrb[4].mxu0 %vm171_vm1, %v6233_v47  ;;  %4136 = vmatmul.mubr.msk.f32.gmra.mrb[24].mxu1 %vm171_vm1, %v5219_v9  ;;  %v6248_v9 = vld [vmem:[#allocation43_spill] sm:$0xff] }
 0x120   : > { %4358 = vmatprep.mubr.msk.f32.mxu0 %vm171_vm1, %v6204_v20  ;;  %4138 = vmatprep.mubr.msk.f32.mxu1 %vm171_vm1, %v5226_v27  ;;  %v6242_v27 = vld [vmem:[#allocation37_spill] sm:$0xff] }
 0x123   : > { %4359 = vmatmul.mubr.msk.f32.gmra.mrb[6].mxu0 %vm171_vm1, %v6205_v57  ;;  %4139 = vmatmul.mubr.msk.f32.gmra.mrb[26].mxu1 %vm171_vm1, %v5240_v37  ;;  %v2886_v37 = vrot.slane %v5658_v25, 2 }
 0x124   : > { %4361 = vmatprep.mubr.msk.f32.mxu0 %vm171_vm1, %v6234_v32  ;;  %4141 = vmatprep.mubr.msk.f32.mxu1 %vm171_vm1, %v5249_v26  ;;  %v2887_v26 = vrot.slane %v5666_v12, 2 }
 0x127   : > { %4362 = vmatmul.mubr.msk.f32.gmra.mrb[8].mxu0 %vm171_vm1, %v6207_v45  ;;  %4142 = vmatmul.mubr.msk.f32.gmra.mrb[28].mxu1 %vm171_vm1, %v6235_v49 }
 0x128   : > { %4364 = vmatprep.mubr.msk.f32.mxu0 %vm171_vm1, %v6236_v14  ;;  %4144 = vmatprep.mubr.msk.f32.mxu1 %vm171_vm1, %v5413_v35  ;;  %v6241_v35 = vld [vmem:[#allocation36_spill] sm:$0xff] }
 0x12b   : > { %4365 = vmatmul.mubr.msk.f32.gmra.mrb[10].mxu0 %vm171_vm1, %v6237_v16  ;;  %4145 = vmatmul.mubr.msk.f32.gmra.mrb[30].mxu1 %vm171_vm1, %v5415_v15  ;;  %v2889_v15 = vrot.slane %v5796_v62, 2 }
 0x12c   : > { %4367 = vmatprep.mubr.msk.f32.mxu0 %vm171_vm1, %v6238_v19  ;;  %4173 = vmatprep.mubr.msk.f32.mxu1 %vm171_vm1, %v5455_v4  ;;  %v6250_v4 = vld [vmem:[#allocation50_spill] sm:$0xff] }
 0x12d   : > { %v2890_v12 = vsel %vm1140_vm3, %v2887_v26, %v2889_v15 }
 0x12f   : > { %4368 = vmatmul.mubr.msk.f32.gmra.mrb[12].mxu0 %vm171_vm1, %v6239_v21  ;;  %4174 = vmatmul.mubr.msk.f32.vlgmr.msra.gmra.mrb[16].mxu1 %vm171_vm1, %v5471_v56 }
 0x130   : > { %4370 = vmatprep.mubr.msk.f32.mxu0 %vm171_vm1, %v6240_v23  ;;  %4176 = vmatprep.mubr.msk.f32.mxu1 %vm171_vm1, %v5475_v54 }
 0x133   : > { %4371 = vmatmul.mubr.msk.f32.gmra.mrb[14].mxu0 %vm171_vm1, %v6241_v35  ;;  %4177 = vmatmul.mubr.msk.f32.gmra.mrb[18].mxu1 %vm171_vm1, %v5488_v59 }
 0x134   : > { %4373 = vmatprep.mubr.msk.f32.mxu0 %vm171_vm1, %v6242_v27  ;;  %4179 = vmatprep.mubr.msk.f32.mxu1 %vm171_vm1, %v5492_v44 }
 0x137   : > { %4374 = vmatmul.mubr.msk.f32.gmra.mrb[16].mxu0 %vm171_vm1, %v6243_v36  ;;  %4180 = vmatmul.mubr.msk.f32.gmra.mrb[20].mxu1 %vm171_vm1, %v5512_v60 }
 0x138   : > { %4376 = vmatprep.mubr.msk.f32.mxu0 %vm171_vm1, %v6244_v58  ;;  %4182 = vmatprep.mubr.msk.f32.mxu1 %vm171_vm1, %v5516_v28 }
 0x13b   : > { %4377 = vmatmul.mubr.msk.f32.gmra.mrb[18].mxu0 %vm171_vm1, %v6245_v0  ;;  %4183 = vmatmul.mubr.msk.f32.gmra.mrb[22].mxu1 %vm171_vm1, %v5531_v18 }
 0x13c   : > { %4379 = vmatprep.mubr.msk.f32.mxu0 %vm171_vm1, %v6246_v13  ;;  %4185 = vmatprep.mubr.msk.f32.mxu1 %vm171_vm1, %v5535_v8 }
 0x13f   : > { %4380 = vmatmul.mubr.msk.f32.gmra.mrb[20].mxu0 %vm171_vm1, %v6247_v51  ;;  %4186 = vmatmul.mubr.msk.f32.gmra.mrb[24].mxu1 %vm171_vm1, %v5548_v55 }
 0x140   : > { %4382 = vmatprep.mubr.msk.f32.mxu0 %vm171_vm1, %v6248_v9  ;;  %4188 = vmatprep.mubr.msk.f32.mxu1 %vm171_vm1, %v5552_v2 }
 0x143   : > { %4383 = vmatmul.mubr.msk.f32.gmra.mrb[22].mxu0 %vm171_vm1, %v6222_v46  ;;  %4189 = vmatmul.mubr.msk.f32.gmra.mrb[26].mxu1 %vm171_vm1, %v5565_v63 }
 0x144   : > { %4385 = vmatprep.mubr.msk.f32.mxu0 %vm171_vm1, %v6224_v5  ;;  %4191 = vmatprep.mubr.msk.f32.mxu1 %vm171_vm1, %v5569_v10 }
 0x147   : > { %4386 = vmatmul.mubr.msk.f32.gmra.mrb[24].mxu0 %vm171_vm1, %v6226_v11  ;;  %4192 = vmatmul.mubr.msk.f32.gmra.mrb[28].mxu1 %vm171_vm1, %v5580_v38  ;;  %v6249_v11 = vld [vmem:[#allocation49_spill] sm:$0xff] }
 0x148   : > { %4388 = vmatprep.mubr.msk.f32.mxu0 %vm171_vm1, %v6228_v17  ;;  %4194 = vmatprep.mubr.msk.f32.mxu1 %vm171_vm1, %v5794_v61  ;;  %v2888_v17 = vsel %vm1140_vm3, %v2886_v37, %v2887_v26 }
 0x14b   : > { %4389 = vmatmul.mubr.msk.f32.gmra.mrb[26].mxu0 %vm171_vm1, %v5445_v24  ;;  %4195 = vmatmul.mubr.msk.f32.gmra.mrb[30].mxu1 %vm171_vm1, %v5805_v1 }
 0x14c   : > { %4391 = vmatprep.mubr.msk.f32.mxu0 %vm171_vm1, %v6249_v11 }
 0x14f   : > { %4392 = vmatmul.mubr.msk.f32.gmra.mrb[28].mxu0 %vm171_vm1, %v6250_v4 }
 0x150   : > { %4394 = vmatprep.mubr.msk.f32.mxu0 %vm171_vm1, %v2888_v17 }
 0x153   : > { %4395 = vmatmul.mubr.msk.f32.gmra.mrb[30].mxu0 %vm171_vm1, %v2890_v12 }
 0x1c2   : > { %v4101_v24 = vpop.f32.mrb[0].mxu1 }
 0x1c3   : > { %v1620_v56 = vpop.f32.mrb[1].mxu1  ;;  %v4399_v43 = vadd.f32 %v4101_v24, %v5960_v6 }
 0x1c4   : > { %v4401_v48 = vadd.f32 %v5960_v6, %v1620_v56 }
 0x1c6   : > { %v4104_v54 = vpop.f32.mrb[2].mxu1 }
 0x1c7   : > { %v1630_v59 = vpop.f32.mrb[3].mxu1  ;;  %v4403_v46 = vadd.f32 %v4104_v54, %v5960_v6 }
 0x1c8   : > { %v4405_v3 = vadd.f32 %v5960_v6, %v1630_v59 }
 0x1ca   : > { %v4107_v44 = vpop.f32.mrb[4].mxu1 }
 0x1cb   : > { %v1640_v60 = vpop.f32.mrb[5].mxu1  ;;  %v4407_v50 = vadd.f32 %v4107_v44, %v5960_v6 }
 0x1cc   : > { %v4409_v61 = vadd.f32 %v5960_v6, %v1640_v60 }
 0x1ce   : > { %v4110_v28 = vpop.f32.mrb[6].mxu1 }
 0x1cf   : > { %v1650_v18 = vpop.f32.mrb[7].mxu1  ;;  %v4411_v49 = vadd.f32 %v4110_v28, %v5960_v6 }
 0x1d0   : > { %v4413_v16 = vadd.f32 %v5960_v6, %v1650_v18 }
 0x1d2   : > { %v4113_v8 = vpop.f32.mrb[8].mxu1 }
 0x1d3   : > { %v1660_v55 = vpop.f32.mrb[9].mxu1  ;;  %v4415_v0 = vadd.f32 %v4113_v8, %v5960_v6 }
 0x1d4   : > { %v4417_v51 = vadd.f32 %v5960_v6, %v1660_v55 }
 0x1d6   : > { %v5945_v2 = vpop.f32.mrb[10].mxu1 }
 0x1d7   : > { %v5947_v63 = vpop.f32.mrb[11].mxu1  ;;  %v4419_v12 = vadd.f32 %v5945_v2, %v5960_v6 }
 0x1d8   : > { %v4421_v56 = vadd.f32 %v5960_v6, %v5947_v63 }
 0x1da   : > { %v5949_v10 = vpop.f32.mrb[12].mxu1 }
 0x1db   : > { %v5951_v38 = vpop.f32.mrb[13].mxu1  ;;  %v4423_v55 = vadd.f32 %v5949_v10, %v5960_v6 }
 0x1dc   : > { %v4425_v63 = vadd.f32 %v5960_v6, %v5951_v38 }
 0x1de   : > { %v5953_v31 = vpop.f32.mrb[14].mxu1 }
 0x1df   : > { %v5955_v53 = vpop.f32.mrb[15].mxu1 }
 0x1ea   : > { %v4351_v45 = vpop.f32.mrb[0].mxu0 }
 0x1eb   : > { %v4400_v20 = vadd.f32 %v4399_v43, %v4351_v45  ;;  %v2964_v57 = vpop.f32.mrb[1].mxu0 }
 0x1ec   : > { %v4402_v25 = vadd.f32 %v4401_v48, %v2964_v57 }
 0x1ed   : > { %vm3156_vm5 = vcmp.ge.f32.partialorder %v4400_v20, 0.0  ;;  %v3188_v5 = vmul.f32 0.01, %v4400_v20 }
 0x1ee   : > { %vm3155_vm7 = vcmp.ge.f32.partialorder %v4402_v25, 0.0  ;;  %v3187_v22 = vmul.f32 0.01, %v4402_v25  ;;  %v4354_v40 = vpop.f32.mrb[2].mxu0 }
 0x1ef   : > { %v3220_v33 = vsel %vm3156_vm5, %v4400_v20, %v3188_v5  ;;  %v4404_v34 = vadd.f32 %v4403_v46, %v4354_v40  ;;  %v2974_v39 = vpop.f32.mrb[3].mxu0 }
 0x1f0   : > { %3253 = vst.msk [vmem:[%s5970_s18 + $0x8] sm:$0xff] %vm3251_vm6, %v3220_v33  ;;  %v3219_v41 = vsel %vm3155_vm7, %v4402_v25, %v3187_v22  ;;  %v4406_v42 = vadd.f32 %v4405_v3, %v2974_v39  ;;  %v4427_v3 = vadd.f32 %v5953_v31, %v5960_v6  ;;  %v4429_v22 = vadd.f32 %v5960_v6, %v5955_v53 }
 0x1f1   : > { %3252 = vst.msk [vmem:[%s5970_s18] sm:$0xff] %vm3251_vm6, %v3219_v41  ;;  %vm3158_vm8 = vcmp.ge.f32.partialorder %v4404_v34, 0.0  ;;  %v3190_v52 = vmul.f32 0.01, %v4404_v34 }
 0x1f2   : > { %vm3157_vm9 = vcmp.ge.f32.partialorder %v4406_v42, 0.0  ;;  %v3189_v62 = vmul.f32 0.01, %v4406_v42  ;;  %v4357_v1 = vpop.f32.mrb[4].mxu0 }
 0x1f3   : > { %v3222_v7 = vsel %vm3158_vm8, %v4404_v34, %v3190_v52  ;;  %v4408_v29 = vadd.f32 %v4407_v50, %v4357_v1  ;;  %v2984_v30 = vpop.f32.mrb[5].mxu0 }
 0x1f4   : > { %3255 = vst.msk [vmem:[%s5970_s18 + $0x18] sm:$0xff] %vm3251_vm6, %v3222_v7  ;;  %v3221_v47 = vsel %vm3157_vm9, %v4406_v42, %v3189_v62  ;;  %v4410_v32 = vadd.f32 %v4409_v61, %v2984_v30 }
 0x1f5   : > { %3254 = vst.msk [vmem:[%s5970_s18 + $0x10] sm:$0xff] %vm3251_vm6, %v3221_v47  ;;  %vm3160_vm10 = vcmp.ge.f32.partialorder %v4408_v29, 0.0  ;;  %v3192_v14 = vmul.f32 0.01, %v4408_v29 }
 0x1f6   : > { %vm3159_vm11 = vcmp.ge.f32.partialorder %v4410_v32, 0.0  ;;  %v3191_v19 = vmul.f32 0.01, %v4410_v32  ;;  %v4360_v21 = vpop.f32.mrb[6].mxu0 }
 0x1f7   : > { %v3224_v23 = vsel %vm3160_vm10, %v4408_v29, %v3192_v14  ;;  %v4412_v35 = vadd.f32 %v4411_v49, %v4360_v21  ;;  %v2994_v27 = vpop.f32.mrb[7].mxu0 }
 0x1f8   : > { %3257 = vst.msk [vmem:[%s5970_s18 + $0x28] sm:$0xff] %vm3251_vm6, %v3224_v23  ;;  %v3223_v36 = vsel %vm3159_vm11, %v4410_v32, %v3191_v19  ;;  %v4414_v58 = vadd.f32 %v4413_v16, %v2994_v27 }
 0x1f9   : > { %3256 = vst.msk [vmem:[%s5970_s18 + $0x20] sm:$0xff] %vm3251_vm6, %v3223_v36  ;;  %vm3162_vm12 = vcmp.ge.f32.partialorder %v4412_v35, 0.0  ;;  %v3194_v13 = vmul.f32 0.01, %v4412_v35 }
 0x1fa   : > { %vm3161_vm13 = vcmp.ge.f32.partialorder %v4414_v58, 0.0  ;;  %v3193_v9 = vmul.f32 0.01, %v4414_v58  ;;  %v4363_v37 = vpop.f32.mrb[8].mxu0 }
 0x1fb   : > { %v3226_v26 = vsel %vm3162_vm12, %v4412_v35, %v3194_v13  ;;  %v4416_v11 = vadd.f32 %v4415_v0, %v4363_v37  ;;  %v3004_v15 = vpop.f32.mrb[9].mxu0 }
 0x1fc   : > { %3259 = vst.msk [vmem:[%s5970_s18 + $0x38] sm:$0xff] %vm3251_vm6, %v3226_v26  ;;  %v3225_v17 = vsel %vm3161_vm13, %v4414_v58, %v3193_v9  ;;  %v4418_v4 = vadd.f32 %v4417_v51, %v3004_v15 }
 0x1fd   : > { %3258 = vst.msk [vmem:[%s5970_s18 + $0x30] sm:$0xff] %vm3251_vm6, %v3225_v17  ;;  %vm3164_vm14 = vcmp.ge.f32.partialorder %v4416_v11, 0.0  ;;  %v3196_v24 = vmul.f32 0.01, %v4416_v11 }
 0x1fe   : > { %vm3163_vm15 = vcmp.ge.f32.partialorder %v4418_v4, 0.0  ;;  %v3195_v54 = vmul.f32 0.01, %v4418_v4  ;;  %v4366_v59 = vpop.f32.mrb[10].mxu0 }
 0x1ff   : > { %v3228_v44 = vsel %vm3164_vm14, %v4416_v11, %v3196_v24  ;;  %v4420_v60 = vadd.f32 %v4419_v12, %v4366_v59  ;;  %v3014_v28 = vpop.f32.mrb[11].mxu0 }
 0x200   : > { %3261 = vst.msk [vmem:[%s5970_s18 + $0x48] sm:$0xff] %vm3251_vm6, %v3228_v44  ;;  %v3227_v18 = vsel %vm3163_vm15, %v4418_v4, %v3195_v54  ;;  %v4422_v8 = vadd.f32 %v4421_v56, %v3014_v28 }
 0x201   : > { %3260 = vst.msk [vmem:[%s5970_s18 + $0x40] sm:$0xff] %vm3251_vm6, %v3227_v18  ;;  %vm3166_vm0 = vcmp.ge.f32.partialorder %v4420_v60, 0.0  ;;  %v3198_v2 = vmul.f32 0.01, %v4420_v60 }
 0x202   : > { %vm3165_vm1 = vcmp.ge.f32.partialorder %v4422_v8, 0.0  ;;  %v3197_v43 = vmul.f32 0.01, %v4422_v8  ;;  %v4369_v48 = vpop.f32.mrb[12].mxu0  ;;  %v4175_v57 = vpop.f32.mrb[16].mxu1 }
 0x203   : > { %v3230_v45 = vsel %vm3166_vm0, %v4420_v60, %v3198_v2  ;;  %v4424_v20 = vadd.f32 %v4423_v55, %v4369_v48  ;;  %v3024_v25 = vpop.f32.mrb[13].mxu0  ;;  %v1970_v5 = vpop.f32.mrb[17].mxu1  ;;  %v4431_v61 = vadd.f32 %v4175_v57, %v5960_v6 }
 0x204   : > { %3263 = vst.msk [vmem:[%s5970_s18 + $0x58] sm:$0xff] %vm3251_vm6, %v3230_v45  ;;  %v3229_v46 = vsel %vm3165_vm1, %v4422_v8, %v3197_v43  ;;  %v4426_v10 = vadd.f32 %v4425_v63, %v3024_v25  ;;  %v4433_v62 = vadd.f32 %v5960_v6, %v1970_v5 }
 0x205   : > { %3262 = vst.msk [vmem:[%s5970_s18 + $0x50] sm:$0xff] %vm3251_vm6, %v3229_v46  ;;  %vm3168_vm2 = vcmp.ge.f32.partialorder %v4424_v20, 0.0  ;;  %v3200_v38 = vmul.f32 0.01, %v4424_v20 }
 0x206   : > { %vm3167_vm3 = vcmp.ge.f32.partialorder %v4426_v10, 0.0  ;;  %v3199_v40 = vmul.f32 0.01, %v4426_v10  ;;  %v4372_v33 = vpop.f32.mrb[14].mxu0  ;;  %v4178_v41 = vpop.f32.mrb[18].mxu1 }
 0x207   : > { %v3232_v34 = vsel %vm3168_vm2, %v4424_v20, %v3200_v38  ;;  %v4428_v39 = vadd.f32 %v4427_v3, %v4372_v33  ;;  %v3034_v42 = vpop.f32.mrb[15].mxu0  ;;  %v1980_v52 = vpop.f32.mrb[19].mxu1  ;;  %v4435_v19 = vadd.f32 %v4178_v41, %v5960_v6 }
 0x208   : > { %3265 = vst.msk [vmem:[%s5970_s18 + $0x68] sm:$0xff] %vm3251_vm6, %v3232_v34  ;;  %v3231_v50 = vsel %vm3167_vm3, %v4426_v10, %v3199_v40  ;;  %v4430_v31 = vadd.f32 %v4429_v22, %v3034_v42  ;;  %v4437_v23 = vadd.f32 %v5960_v6, %v1980_v52 }
 0x209   : > { %3264 = vst.msk [vmem:[%s5970_s18 + $0x60] sm:$0xff] %vm3251_vm6, %v3231_v50  ;;  %vm3170_vm4 = vcmp.ge.f32.partialorder %v4428_v39, 0.0  ;;  %v3202_v53 = vmul.f32 0.01, %v4428_v39 }
 0x20a   : > { %vm3169_vm5 = vcmp.ge.f32.partialorder %v4430_v31, 0.0  ;;  %v3201_v1 = vmul.f32 0.01, %v4430_v31  ;;  %v4375_v7 = vpop.f32.mrb[16].mxu0  ;;  %v4181_v47 = vpop.f32.mrb[20].mxu1 }
 0x20b   : > { %v3234_v29 = vsel %vm3170_vm4, %v4428_v39, %v3202_v53  ;;  %v4432_v30 = vadd.f32 %v4431_v61, %v4375_v7  ;;  %v3044_v32 = vpop.f32.mrb[17].mxu0  ;;  %v1990_v16 = vpop.f32.mrb[21].mxu1  ;;  %v4439_v26 = vadd.f32 %v4181_v47, %v5960_v6 }
 0x20c   : > { %3267 = vst.msk [vmem:[%s5970_s18 + $0x78] sm:$0xff] %vm3251_vm6, %v3234_v29  ;;  %v3233_v49 = vsel %vm3169_vm5, %v4430_v31, %v3201_v1  ;;  %v4434_v14 = vadd.f32 %v4433_v62, %v3044_v32  ;;  %v4441_v15 = vadd.f32 %v5960_v6, %v1990_v16 }
 0x20d   : > { %3266 = vst.msk [vmem:[%s5970_s18 + $0x70] sm:$0xff] %vm3251_vm6, %v3233_v49  ;;  %vm3172_vm7 = vcmp.ge.f32.partialorder %v4432_v30, 0.0  ;;  %v3204_v21 = vmul.f32 0.01, %v4432_v30 }
 0x20e   : > { %vm3171_vm8 = vcmp.ge.f32.partialorder %v4434_v14, 0.0  ;;  %v3203_v35 = vmul.f32 0.01, %v4434_v14  ;;  %v4378_v27 = vpop.f32.mrb[18].mxu0  ;;  %v4184_v0 = vpop.f32.mrb[22].mxu1 }
 0x20f   : > { %v3236_v36 = vsel %vm3172_vm7, %v4432_v30, %v3204_v21  ;;  %v4436_v58 = vadd.f32 %v4435_v19, %v4378_v27  ;;  %v3054_v13 = vpop.f32.mrb[19].mxu0  ;;  %v2000_v37 = vpop.f32.mrb[23].mxu1  ;;  %v4443_v28 = vadd.f32 %v4184_v0, %v5960_v6 }
 0x210   : > { %3269 = vst.msk [vmem:[%s5970_s18 + $0x88] sm:$0xff] %vm3251_vm6, %v3236_v36  ;;  %v3235_v51 = vsel %vm3171_vm8, %v4434_v14, %v3203_v35  ;;  %v4438_v9 = vadd.f32 %v4437_v23, %v3054_v13  ;;  %v4445_v8 = vadd.f32 %v5960_v6, %v2000_v37 }
 0x211   : > { %3268 = vst.msk [vmem:[%s5970_s18 + $0x80] sm:$0xff] %vm3251_vm6, %v3235_v51  ;;  %vm3174_vm9 = vcmp.ge.f32.partialorder %v4436_v58, 0.0  ;;  %v3206_v11 = vmul.f32 0.01, %v4436_v58 }
 0x212   : > { %vm3173_vm10 = vcmp.ge.f32.partialorder %v4438_v9, 0.0  ;;  %v3205_v17 = vmul.f32 0.01, %v4438_v9  ;;  %v4381_v4 = vpop.f32.mrb[20].mxu0  ;;  %v4187_v56 = vpop.f32.mrb[24].mxu1 }
 0x213   : > { %v3238_v12 = vsel %vm3174_vm9, %v4436_v58, %v3206_v11  ;;  %v4440_v24 = vadd.f32 %v4439_v26, %v4381_v4  ;;  %v3064_v54 = vpop.f32.mrb[21].mxu0  ;;  %v2010_v60 = vpop.f32.mrb[25].mxu1  ;;  %v4447_v46 = vadd.f32 %v4187_v56, %v5960_v6 }
 0x214   : > { %3271 = vst.msk [vmem:[%s5970_s18 + $0x98] sm:$0xff] %vm3251_vm6, %v3238_v12  ;;  %v3237_v59 = vsel %vm3173_vm10, %v4438_v9, %v3205_v17  ;;  %v4442_v44 = vadd.f32 %v4441_v15, %v3064_v54  ;;  %v4449_v5 = vadd.f32 %v5960_v6, %v2010_v60 }
 0x215   : > { %3270 = vst.msk [vmem:[%s5970_s18 + $0x90] sm:$0xff] %vm3251_vm6, %v3237_v59  ;;  %vm3176_vm11 = vcmp.ge.f32.partialorder %v4440_v24, 0.0  ;;  %v3208_v18 = vmul.f32 0.01, %v4440_v24 }
 0x216   : > { %vm3175_vm12 = vcmp.ge.f32.partialorder %v4442_v44, 0.0  ;;  %v3207_v55 = vmul.f32 0.01, %v4442_v44  ;;  %v4384_v2 = vpop.f32.mrb[22].mxu0  ;;  %v4190_v48 = vpop.f32.mrb[26].mxu1 }
 0x217   : > { %v3240_v63 = vsel %vm3176_vm11, %v4440_v24, %v3208_v18  ;;  %v4444_v43 = vadd.f32 %v4443_v28, %v4384_v2  ;;  %v3074_v45 = vpop.f32.mrb[23].mxu0  ;;  %v2020_v25 = vpop.f32.mrb[27].mxu1  ;;  %v4451_v50 = vadd.f32 %v4190_v48, %v5960_v6 }
 0x218   : > { %3273 = vst.msk [vmem:[%s5970_s18 + $0xa8] sm:$0xff] %vm3251_vm6, %v3240_v63  ;;  %v3239_v20 = vsel %vm3175_vm12, %v4442_v44, %v3207_v55  ;;  %v4446_v57 = vadd.f32 %v4445_v8, %v3074_v45  ;;  %v4453_v52 = vadd.f32 %v5960_v6, %v2020_v25 }
 0x219   : > { %3272 = vst.msk [vmem:[%s5970_s18 + $0xa0] sm:$0xff] %vm3251_vm6, %v3239_v20  ;;  %vm3178_vm13 = vcmp.ge.f32.partialorder %v4444_v43, 0.0  ;;  %v3210_v10 = vmul.f32 0.01, %v4444_v43 }
 0x21a   : > { %vm3177_vm14 = vcmp.ge.f32.partialorder %v4446_v57, 0.0  ;;  %v3209_v3 = vmul.f32 0.01, %v4446_v57  ;;  %v4387_v38 = vpop.f32.mrb[24].mxu0  ;;  %v4193_v33 = vpop.f32.mrb[28].mxu1 }
 0x21b   : > { %v3242_v22 = vsel %vm3178_vm13, %v4444_v43, %v3210_v10  ;;  %v4448_v40 = vadd.f32 %v4447_v46, %v4387_v38  ;;  %v3084_v34 = vpop.f32.mrb[25].mxu0  ;;  %v2030_v42 = vpop.f32.mrb[29].mxu1  ;;  %v4455_v49 = vadd.f32 %v4193_v33, %v5960_v6 }
 0x21c   : > { %3275 = vst.msk [vmem:[%s5970_s18 + $0xb8] sm:$0xff] %vm3251_vm6, %v3242_v22  ;;  %v3241_v39 = vsel %vm3177_vm14, %v4446_v57, %v3209_v3  ;;  %v4450_v41 = vadd.f32 %v4449_v5, %v3084_v34  ;;  %v4457_v16 = vadd.f32 %v5960_v6, %v2030_v42 }
 0x21d   : > { %3274 = vst.msk [vmem:[%s5970_s18 + $0xb0] sm:$0xff] %vm3251_vm6, %v3241_v39  ;;  %vm3180_vm15 = vcmp.ge.f32.partialorder %v4448_v40, 0.0  ;;  %v3212_v31 = vmul.f32 0.01, %v4448_v40 }
 0x21e   : > { %vm3179_vm0 = vcmp.ge.f32.partialorder %v4450_v41, 0.0  ;;  %v3211_v61 = vmul.f32 0.01, %v4450_v41  ;;  %v4390_v53 = vpop.f32.mrb[26].mxu0  ;;  %v4196_v7 = vpop.f32.mrb[30].mxu1 }
 0x21f   : > { %v3244_v62 = vsel %vm3180_vm15, %v4448_v40, %v3212_v31  ;;  %v4452_v1 = vadd.f32 %v4451_v50, %v4390_v53  ;;  %v3094_v29 = vpop.f32.mrb[27].mxu0  ;;  %v2040_v32 = vpop.f32.mrb[31].mxu1  ;;  %v4459_v0 = vadd.f32 %v4196_v7, %v5960_v6 }
 0x220   : > { %3277 = vst.msk [vmem:[%s5970_s18 + $0xc8] sm:$0xff] %vm3251_vm6, %v3244_v62  ;;  %v3243_v30 = vsel %vm3179_vm0, %v4450_v41, %v3211_v61  ;;  %v4454_v47 = vadd.f32 %v4453_v52, %v3094_v29  ;;  %v4461_v51 = vadd.f32 %v5960_v6, %v2040_v32 }
 0x221   : > { %3276 = vst.msk [vmem:[%s5970_s18 + $0xc0] sm:$0xff] %vm3251_vm6, %v3243_v30  ;;  %vm3182_vm1 = vcmp.ge.f32.partialorder %v4452_v1, 0.0  ;;  %v3214_v14 = vmul.f32 0.01, %v4452_v1 }
 0x222   : > { %vm3181_vm2 = vcmp.ge.f32.partialorder %v4454_v47, 0.0  ;;  %v3213_v19 = vmul.f32 0.01, %v4454_v47  ;;  %v4393_v21 = vpop.f32.mrb[28].mxu0 }
 0x223   : > { %v3246_v23 = vsel %vm3182_vm1, %v4452_v1, %v3214_v14  ;;  %v4456_v35 = vadd.f32 %v4455_v49, %v4393_v21  ;;  %v3104_v27 = vpop.f32.mrb[29].mxu0 }
 0x224   : > { %3279 = vst.msk [vmem:[%s5970_s18 + $0xd8] sm:$0xff] %vm3251_vm6, %v3246_v23  ;;  %v3245_v36 = vsel %vm3181_vm2, %v4454_v47, %v3213_v19  ;;  %v4458_v58 = vadd.f32 %v4457_v16, %v3104_v27 }
 0x225   : > { %3278 = vst.msk [vmem:[%s5970_s18 + $0xd0] sm:$0xff] %vm3251_vm6, %v3245_v36  ;;  %vm3184_vm3 = vcmp.ge.f32.partialorder %v4456_v35, 0.0  ;;  %v3216_v13 = vmul.f32 0.01, %v4456_v35 }
 0x226   : > { %vm3183_vm4 = vcmp.ge.f32.partialorder %v4458_v58, 0.0  ;;  %v3215_v9 = vmul.f32 0.01, %v4458_v58  ;;  %v4396_v37 = vpop.f32.mrb[30].mxu0 }
 0x227   : > { %v3248_v26 = vsel %vm3184_vm3, %v4456_v35, %v3216_v13  ;;  %v4460_v11 = vadd.f32 %v4459_v0, %v4396_v37  ;;  %v3114_v15 = vpop.f32.mrb[31].mxu0 }
 0x228   : > { %3281 = vst.msk [vmem:[%s5970_s18 + $0xe8] sm:$0xff] %vm3251_vm6, %v3248_v26  ;;  %v3247_v17 = vsel %vm3183_vm4, %v4458_v58, %v3215_v9  ;;  %v4462_v4 = vadd.f32 %v4461_v51, %v3114_v15 }
 0x229   : > { %3280 = vst.msk [vmem:[%s5970_s18 + $0xe0] sm:$0xff] %vm3251_vm6, %v3247_v17  ;;  %vm3186_vm5 = vcmp.ge.f32.partialorder %v4460_v11, 0.0  ;;  %v3218_v12 = vmul.f32 0.01, %v4460_v11 }
 0x22a   : > { %vm3185_vm7 = vcmp.ge.f32.partialorder %v4462_v4, 0.0  ;;  %v3217_v24 = vmul.f32 0.01, %v4462_v4 }
 0x22b   : > { %v3250_v56 = vsel %vm3186_vm5, %v4460_v11, %v3218_v12 }
 0x22c   : > { %3283 = vst.msk [vmem:[%s5970_s18 + $0xf8] sm:$0xff] %vm3251_vm6, %v3250_v56  ;;  %v3249_v6 = vsel %vm3185_vm7, %v4462_v4, %v3217_v24 }
 0x22d   : > { %3282 = vst.msk [vmem:[%s5970_s18 + $0xf0] sm:$0xff] %vm3251_vm6, %v3249_v6 }
 0x22e PF: > { %s13_s12 = sadd.s32 1, %s4703_s12  }
 0x22f   : > { %p10_p4 = scmp.ge.s32.totalorder %s13_s12, 4  }
 0x231   :  { %12 = sbr.rel (!%p10_p4) target bundleno = 1 (0x1), region = 63 }

</bundles_post_ra>
